<compile_context>
chip_gen: v7x
topology: tpu7x:2x2x1
jax: 0.10.0
libtpu: 0.0.40
codegen_flags: <defaults>
</compile_context>

<pallas_src>
import functools

import jax
import jax.numpy as jnp
from jax.experimental import pallas as pl
from jax.experimental.pallas import tpu as pltpu


_VMEM = pl.BlockSpec(memory_space=pltpu.MemorySpace.VMEM)


# ----------------------------------------------------------------------------
# Fused Pallas kernel: 3x (conv+BN+ReLU) -> avg-pool -> MLP -> softmax
# ----------------------------------------------------------------------------
def _fused_forward_kernel(n_batch, conv_cfgs,
                          x_ref,
                          wc0_ref, bc0_ref, wc1_ref, bc1_ref, wc2_ref, bc2_ref,
                          fw1_ref, fb1_ref, fw2_ref, fb2_ref, fw3_ref, fb3_ref,
                          o_ref,
                          a2_l2_ref, a2_l3_ref):
    """Whole forward pass in one kernel invocation (no grid).

    Activation layout ("row-pair", pad-column-free): matrix row (n, q) holds
    the two zero-padded image rows (2q, 2q+1); within a row, packed position
    p in {0,1} occupies lanes [p*W*C, (p+1)*W*C) with lane index (col, chan).
    The top/bottom pad rows are the all-zero packed halves at q=0,p=0 and
    q=last,p=1.  conv_cfgs: (hout, wout, cout) per conv layer (static ints).
    """
    f32 = jnp.float32

    # Pad packed-rows of the row-pair buffers must be exact zeros.
    a2_l2_ref[...] = jnp.zeros(a2_l2_ref.shape, f32)
    a2_l3_ref[...] = jnp.zeros(a2_l3_ref.shape, f32)

    def conv_layer(a2, wc_ref, bias_ref, hout, wout, cout):
        """a2: (n_batch*(hout+1), 2*win*cin) row-pair activation (value)."""
        qh = hout + 1
        half = wout * cout
        # One MXU matmul evaluates all 9 taps of all output positions:
        #   conv[i] = B[i, :half] + B[i+1, half:]
        b = jnp.dot(a2.astype(jnp.bfloat16), wc_ref[...],
                    preferred_element_type=f32)                  # (n*qh, 2*half)
        bias = bias_ref[...]                                     # (1, half)
        ys = []
        for nb in range(n_batch):
            lo = b[nb * qh:nb * qh + hout, 0:half]               # taps kh in {0,1}
            hi = b[nb * qh + 1:nb * qh + 1 + hout, half:2 * half]  # tap kh = 2
            ys.append(jnp.maximum(lo + hi + bias, 0.0))          # (hout, wout*cout)
        return ys

    def scatter_rows(ys, dst_ref, hout, wout, cout):
        """Scatter conv output rows into the next layer's row-pair buffer.

        All stores are 128-lane aligned and lane-complete (half = wout*cout is
        a multiple of 128 for every layer here).
        """
        half = wout * cout
        qh_next = hout // 2 + 1
        for nb in range(n_batch):
            y = ys[nb]
            base = nb * qh_next
            # q = 0: only packed p=1 carries data (output row 0); p=0 is pad.
            dst_ref[base:base + 1, half:2 * half] = y[0:1, :]
            # Interior destination rows: both packed halves -> one full store.
            for q in range(1, hout // 2):
                dst_ref[base + q:base + q + 1, :] = jnp.concatenate(
                    [y[2 * q - 1:2 * q, :], y[2 * q:2 * q + 1, :]], axis=-1)
            # q = hout//2: only packed p=0 carries data (last output row).
            last = base + hout // 2
            dst_ref[last:last + 1, 0:half] = y[hout - 1:hout, :]

    (h1o, w1o, c1o), (h2o, w2o, c2o), (h3o, w3o, c3o) = conv_cfgs

    y1 = conv_layer(x_ref[...], wc0_ref, bc0_ref, h1o, w1o, c1o)
    scatter_rows(y1, a2_l2_ref, h1o, w1o, c1o)

    y2 = conv_layer(a2_l2_ref[...], wc1_ref, bc1_ref, h2o, w2o, c2o)
    scatter_rows(y2, a2_l3_ref, h2o, w2o, c2o)

    y3 = conv_layer(a2_l3_ref[...], wc2_ref, bc2_ref, h3o, w3o, c3o)

    # AdaptiveAvgPool2d(1) + Flatten: mean over h3o*w3o spatial positions.
    inv = 1.0 / float(h3o * w3o)
    pooled_rows = []
    for nb in range(n_batch):
        s = jnp.sum(y3[nb], axis=0, keepdims=True)               # (1, w3o*c3o)
        acc = s[:, 0:c3o]
        for j in range(1, w3o):
            acc = acc + s[:, j * c3o:(j + 1) * c3o]
        pooled_rows.append(acc * inv)
    pooled = jnp.concatenate(pooled_rows, axis=0)                # (n, c3o)

    # MLP head (Dropout == identity in inference mode) + softmax.
    h1 = jnp.dot(pooled.astype(jnp.bfloat16), fw1_ref[...],
                 preferred_element_type=f32) + fb1_ref[...]
    h1 = jnp.maximum(h1, 0.0)
    h2 = jnp.dot(h1.astype(jnp.bfloat16), fw2_ref[...],
                 preferred_element_type=f32) + fb2_ref[...]
    h2 = jnp.maximum(h2, 0.0)
    logits = jnp.dot(h2.astype(jnp.bfloat16), fw3_ref[...],
                     preferred_element_type=f32) + fb3_ref[...]
    # Padded class lanes carry a -1e30 bias -> exp() == 0, softmax stays exact.
    m = jnp.max(logits, axis=-1, keepdims=True)
    e = jnp.exp(logits - m)
    o_ref[...] = e / jnp.sum(e, axis=-1, keepdims=True)


# ----------------------------------------------------------------------------
# One-time parameter preparation (hoisted out of the per-call path)
# ----------------------------------------------------------------------------
def _fold_bn(conv_b, gamma, beta, mean, var, eps=1e-5):
    scale = gamma / jnp.sqrt(var + eps)
    shift = (conv_b - mean) * scale + beta
    return scale, shift


def _conv_pair_matrix(w_conv, bn_scale, win, wout):
    """Build WC = [WL | WH] for the pad-free row-pair conv formulation.

    w_conv: (cout, cin, 3, 3) torch-layout conv weight (BN scale folded in).
    Returns (2*win*cin, 2*wout*cout) such that with the row-pair activation A2
    (lane order (p, col, cin)):  B = A2 @ WC ;  conv[i] = B[i,:half]+B[i+1,half:].
    """
    cout, cin = w_conv.shape[0], w_conv.shape[1]
    # (kh, kw, cin, cout) with the per-channel BN scale folded in.
    wf = jnp.transpose(w_conv, (2, 3, 1, 0)) * bn_scale[None, None, None, :]
    v = jnp.arange(win)[:, None]                             # input col
    j = jnp.arange(wout)[None, :]                            # output col
    kw = v - 2 * j + 1                                       # tap index
    valid = ((kw >= 0) & (kw <= 2)).astype(wf.dtype)         # (win, wout)
    g = wf[:, jnp.clip(kw, 0, 2)]                            # (3, win, wout, cin, cout)
    g = g * valid[None, :, :, None, None]
    # WL: taps kh in {0,1} applied to packed rows p in {0,1} of row-pair q=i.
    wl = jnp.transpose(g[0:2], (0, 1, 3, 2, 4)).reshape(2 * win * cin, wout * cout)
    # WH: tap kh=2 applied to packed row p=0 of row-pair q=i+1 (p=1 is zero).
    wh0 = jnp.transpose(g[2], (0, 2, 1, 3)).reshape(win * cin, wout * cout)
    wh = jnp.concatenate([wh0, jnp.zeros_like(wh0)], axis=0)
    return jnp.concatenate([wl, wh], axis=1)


def prepare_params(params, num_classes, height=16, width=16):
    """Fold BN, build row-pair conv matrices (bf16) and padded head weights."""
    conv_dims = [(3, 32), (32, 64), (64, 128)]
    prep = {}
    h, w = height, width
    for i, (_cin, cout) in enumerate(conv_dims):
        hout, wout = h // 2, w // 2
        scale, shift = _fold_bn(params[f"conv{i}_b"], params[f"bn{i}_gamma"],
                                params[f"bn{i}_beta"], params[f"bn{i}_mean"],
                                params[f"bn{i}_var"])
        wc = _conv_pair_matrix(params[f"conv{i}_w"], scale, w, wout)
        prep[f"wc{i}"] = wc.astype(jnp.bfloat16)
        prep[f"bc{i}"] = jnp.tile(shift, wout).reshape(1, wout * cout)
        h, w = hout, wout

    ncp = max(128, ((num_classes + 127) // 128) * 128)       # lane-dense output
    prep["fw1"] = params["fc1_w"].astype(jnp.bfloat16)
    prep["fb1"] = params["fc1_b"].reshape(1, -1)
    prep["fw2"] = params["fc2_w"].astype(jnp.bfloat16)
    prep["fb2"] = params["fc2_b"].reshape(1, -1)
    w3 = jnp.zeros((params["fc3_w"].shape[0], ncp), jnp.float32)
    w3 = w3.at[:, :num_classes].set(params["fc3_w"])
    b3 = jnp.full((1, ncp), -1e30, jnp.float32)
    b3 = b3.at[0, :num_classes].set(params["fc3_b"])
    prep["fw3"] = w3.astype(jnp.bfloat16)
    prep["fb3"] = b3
    return prep


# ----------------------------------------------------------------------------
# Synthetic, deterministic parameters (PyTorch-default-like init)
# ----------------------------------------------------------------------------
def init_params(key, num_classes):
    keys = jax.random.split(key, 12)
    params = {}

    def conv_w(k, cout, cin):
        bound = 1.0 / jnp.sqrt(cin * 9)
        return jax.random.uniform(k, (cout, cin, 3, 3), jnp.float32, -bound, bound)

    def lin(kw, kb, fin, fout):
        bound = 1.0 / jnp.sqrt(fin)
        w = jax.random.uniform(kw, (fin, fout), jnp.float32, -bound, bound)
        b = jax.random.uniform(kb, (fout,), jnp.float32, -bound, bound)
        return w, b

    conv_dims = [(3, 32), (32, 64), (64, 128)]
    for i, (cin, cout) in enumerate(conv_dims):
        params[f"conv{i}_w"] = conv_w(keys[2 * i], cout, cin)
        bound = 1.0 / jnp.sqrt(cin * 9)
        params[f"conv{i}_b"] = jax.random.uniform(
            keys[2 * i + 1], (cout,), jnp.float32, -bound, bound)
        params[f"bn{i}_gamma"] = jnp.ones((cout,), jnp.float32)
        params[f"bn{i}_beta"] = jnp.zeros((cout,), jnp.float32)
        params[f"bn{i}_mean"] = jnp.zeros((cout,), jnp.float32)
        params[f"bn{i}_var"] = jnp.ones((cout,), jnp.float32)

    params["fc1_w"], params["fc1_b"] = lin(keys[6], keys[7], 128, 512)
    params["fc2_w"], params["fc2_b"] = lin(keys[8], keys[9], 512, 64)
    params["fc3_w"], params["fc3_b"] = lin(keys[10], keys[11], 64, num_classes)
    return params


# ----------------------------------------------------------------------------
# Forward pass wrapper (single pallas_call)
# ----------------------------------------------------------------------------
@functools.partial(jax.jit, static_argnames=("num_classes",))
def model_forward(x_nchw, prep, num_classes=10):
    x = jnp.transpose(x_nchw, (0, 2, 3, 1)).astype(jnp.float32)   # NHWC
    n, h, w, cin = x.shape
    # Row-pair layout of the row-padded input: row (n, q) = padded rows (2q, 2q+1).
    xp = jnp.pad(x, ((0, 0), (1, 1), (0, 0), (0, 0)))
    qh = h // 2 + 1
    x_a2 = xp.reshape(n, qh, 2 * w * cin).reshape(n * qh, 2 * w * cin)

    conv_cfgs = ((h // 2, w // 2, 32), (h // 4, w // 4, 64), (h // 8, w // 8, 128))
    (h1o, w1o, c1o), (h2o, w2o, c2o), (h3o, w3o, c3o) = conv_cfgs
    ncp = prep["fw3"].shape[1]

    operands = (x_a2,
                prep["wc0"], prep["bc0"], prep["wc1"], prep["bc1"],
                prep["wc2"], prep["bc2"],
                prep["fw1"], prep["fb1"], prep["fw2"], prep["fb2"],
                prep["fw3"], prep["fb3"])

    # Advisory cost hint so XLA schedules the fused call sensibly.
    mm = [(n * (h1o + 1), 2 * w * cin, 2 * w1o * c1o),
          (n * (h2o + 1), 2 * w1o * c1o, 2 * w2o * c2o),
          (n * (h3o + 1), 2 * w2o * c2o, 2 * w3o * c3o),
          (n, c3o, prep["fw1"].shape[1]),
          (n, prep["fw2"].shape[0], prep["fw2"].shape[1]),
          (n, prep["fw3"].shape[0], ncp)]
    flops = 2 * sum(m * k * c for m, k, c in mm)
    bytes_accessed = sum(int(a.size) * a.dtype.itemsize for a in operands) + n * ncp * 4

    kernel = functools.partial(_fused_forward_kernel, n, conv_cfgs)
    out = pl.pallas_call(
        kernel,
        out_shape=jax.ShapeDtypeStruct((n, ncp), jnp.float32),
        in_specs=[_VMEM] * len(operands),
        out_specs=_VMEM,
        scratch_shapes=[
            pltpu.VMEM((n * (h2o + 1), 2 * w1o * c1o), jnp.float32),
            pltpu.VMEM((n * (h3o + 1), 2 * w2o * c2o), jnp.float32),
        ],
        cost_estimate=pl.CostEstimate(flops=flops, transcendentals=n * ncp,
                                      bytes_accessed=bytes_accessed),
    )(*operands)
    return out[:, :num_classes]


if __name__ == "__main__":
    num_classes = 10
    key = jax.random.PRNGKey(0)
    k_params, k_x = jax.random.split(key)

    params = init_params(k_params, num_classes)
    prep = prepare_params(params, num_classes, height=16, width=16)
    x = jax.random.normal(k_x, (2, 3, 16, 16), jnp.float32)  # NCHW like PyTorch

    out = model_forward(x, prep, num_classes=num_classes)
    out = jax.block_until_ready(out)

    assert out.shape == (2, num_classes)
    # Softmax rows must sum to ~1.
    assert jnp.allclose(jnp.sum(out, axis=-1), 1.0, atol=1e-5)
    print("KERNEL_OK")
</pallas_src>

<mosaic_0001>
module attributes {stable_mosaic.version = 11 : i64} {
  func.func @_fused_forward_kernel(%arg0: memref<18x96xf32, #tpu.memory_space<vmem>>, %arg1: memref<96x512xbf16, #tpu.memory_space<vmem>>, %arg2: memref<1x256xf32, #tpu.memory_space<vmem>>, %arg3: memref<512x512xbf16, #tpu.memory_space<vmem>>, %arg4: memref<1x256xf32, #tpu.memory_space<vmem>>, %arg5: memref<512x512xbf16, #tpu.memory_space<vmem>>, %arg6: memref<1x256xf32, #tpu.memory_space<vmem>>, %arg7: memref<128x512xbf16, #tpu.memory_space<vmem>>, %arg8: memref<1x512xf32, #tpu.memory_space<vmem>>, %arg9: memref<512x64xbf16, #tpu.memory_space<vmem>>, %arg10: memref<1x64xf32, #tpu.memory_space<vmem>>, %arg11: memref<64x128xbf16, #tpu.memory_space<vmem>>, %arg12: memref<1x128xf32, #tpu.memory_space<vmem>>, %arg13: memref<2x128xf32, #tpu.memory_space<vmem>>, %arg14: memref<10x512xf32, #tpu.memory_space<vmem>>, %arg15: memref<6x512xf32, #tpu.memory_space<vmem>>) attributes {dimension_semantics = [], scalar_prefetch = 0 : i64, scratch_operands = 2 : i64, tpu.core_type = #tpu.core_type<tc>} {
    %cst = arith.constant 0.000000e+00 : f32
    %0 = vector.broadcast %cst : f32 to vector<10x512xf32>
    %c0 = arith.constant 0 : index
    %c0_0 = arith.constant 0 : index
    %1 = vector.load %arg14[%c0, %c0_0] : memref<10x512xf32, #tpu.memory_space<vmem>>, vector<10x512xf32>
    tpu.vector_store %arg14[%c0, %c0_0], %0 {strides = array<i32>} : memref<10x512xf32, #tpu.memory_space<vmem>>, vector<10x512xf32>,
    %cst_1 = arith.constant 0.000000e+00 : f32
    %2 = vector.broadcast %cst_1 : f32 to vector<6x512xf32>
    %c0_2 = arith.constant 0 : index
    %c0_3 = arith.constant 0 : index
    %3 = vector.load %arg15[%c0_2, %c0_3] : memref<6x512xf32, #tpu.memory_space<vmem>>, vector<6x512xf32>
    tpu.vector_store %arg15[%c0_2, %c0_3], %2 {strides = array<i32>} : memref<6x512xf32, #tpu.memory_space<vmem>>, vector<6x512xf32>,
    %c0_4 = arith.constant 0 : index
    %c0_5 = arith.constant 0 : index
    %4 = vector.load %arg0[%c0_4, %c0_5] : memref<18x96xf32, #tpu.memory_space<vmem>>, vector<18x96xf32>
    %5 = arith.truncf %4 : vector<18x96xf32> to vector<18x96xbf16>
    %c0_6 = arith.constant 0 : index
    %c0_7 = arith.constant 0 : index
    %6 = vector.load %arg1[%c0_6, %c0_7] : memref<96x512xbf16, #tpu.memory_space<vmem>>, vector<96x512xbf16>
    %cst_8 = arith.constant dense<0.000000e+00> : vector<18x512xf32>
    %7 = tpu.matmul %5, %6, %cst_8 {dimension_numbers = #tpu.dot_dimension_numbers<[1], [0], [0], [1], [0, 0, 1, 1], [], []>} : vector<18x96xbf16>, vector<96x512xbf16>, vector<18x512xf32> -> vector<18x512xf32>
    %c0_9 = arith.constant 0 : index
    %c0_10 = arith.constant 0 : index
    %8 = vector.load %arg2[%c0_9, %c0_10] : memref<1x256xf32, #tpu.memory_space<vmem>>, vector<1x256xf32>
    %9 = vector.extract_strided_slice %7 {offsets = [0, 0], sizes = [8, 256], strides = [1, 1]} : vector<18x512xf32> to vector<8x256xf32>
    %10 = vector.extract_strided_slice %7 {offsets = [1, 256], sizes = [8, 256], strides = [1, 1]} : vector<18x512xf32> to vector<8x256xf32>
    %11 = arith.addf %9, %10 : vector<8x256xf32>
    %12 = vector.broadcast %8 : vector<1x256xf32> to vector<8x256xf32>
    %13 = arith.addf %11, %12 : vector<8x256xf32>
    %cst_11 = arith.constant 0.000000e+00 : f32
    %14 = vector.broadcast %cst_11 : f32 to vector<8x256xf32>
    %15 = arith.maximumf %13, %14 : vector<8x256xf32>
    %16 = vector.extract_strided_slice %7 {offsets = [9, 0], sizes = [8, 256], strides = [1, 1]} : vector<18x512xf32> to vector<8x256xf32>
    %17 = vector.extract_strided_slice %7 {offsets = [10, 256], sizes = [8, 256], strides = [1, 1]} : vector<18x512xf32> to vector<8x256xf32>
    %18 = arith.addf %16, %17 : vector<8x256xf32>
    %19 = vector.broadcast %8 : vector<1x256xf32> to vector<8x256xf32>
    %20 = arith.addf %18, %19 : vector<8x256xf32>
    %cst_12 = arith.constant 0.000000e+00 : f32
    %21 = vector.broadcast %cst_12 : f32 to vector<8x256xf32>
    %22 = arith.maximumf %20, %21 : vector<8x256xf32>
    %23 = vector.extract_strided_slice %15 {offsets = [0, 0], sizes = [1, 256], strides = [1, 1]} : vector<8x256xf32> to vector<1x256xf32>
    %c0_13 = arith.constant 0 : index
    %c256 = arith.constant 256 : index
    %24 = vector.load %arg14[%c0_13, %c256] : memref<10x512xf32, #tpu.memory_space<vmem>>, vector<1x256xf32>
    tpu.vector_store %arg14[%c0_13, %c256], %23 {strides = array<i32>} : memref<10x512xf32, #tpu.memory_space<vmem>>, vector<1x256xf32>,
    %25 = vector.extract_strided_slice %15 {offsets = [1, 0], sizes = [1, 256], strides = [1, 1]} : vector<8x256xf32> to vector<1x256xf32>
    %26 = vector.extract_strided_slice %15 {offsets = [2, 0], sizes = [1, 256], strides = [1, 1]} : vector<8x256xf32> to vector<1x256xf32>
    %27 = tpu.concatenate %25, %26 in 1 : vector<1x256xf32>, vector<1x256xf32> -> vector<1x512xf32>
    %c1 = arith.constant 1 : index
    %c0_14 = arith.constant 0 : index
    %28 = vector.load %arg14[%c1, %c0_14] : memref<10x512xf32, #tpu.memory_space<vmem>>, vector<1x512xf32>
    tpu.vector_store %arg14[%c1, %c0_14], %27 {strides = array<i32>} : memref<10x512xf32, #tpu.memory_space<vmem>>, vector<1x512xf32>,
    %29 = vector.extract_strided_slice %15 {offsets = [3, 0], sizes = [1, 256], strides = [1, 1]} : vector<8x256xf32> to vector<1x256xf32>
    %30 = vector.extract_strided_slice %15 {offsets = [4, 0], sizes = [1, 256], strides = [1, 1]} : vector<8x256xf32> to vector<1x256xf32>
    %31 = tpu.concatenate %29, %30 in 1 : vector<1x256xf32>, vector<1x256xf32> -> vector<1x512xf32>
    %c2 = arith.constant 2 : index
    %c0_15 = arith.constant 0 : index
    %32 = vector.load %arg14[%c2, %c0_15] : memref<10x512xf32, #tpu.memory_space<vmem>>, vector<1x512xf32>
    tpu.vector_store %arg14[%c2, %c0_15], %31 {strides = array<i32>} : memref<10x512xf32, #tpu.memory_space<vmem>>, vector<1x512xf32>,
    %33 = vector.extract_strided_slice %15 {offsets = [5, 0], sizes = [1, 256], strides = [1, 1]} : vector<8x256xf32> to vector<1x256xf32>
    %34 = vector.extract_strided_slice %15 {offsets = [6, 0], sizes = [1, 256], strides = [1, 1]} : vector<8x256xf32> to vector<1x256xf32>
    %35 = tpu.concatenate %33, %34 in 1 : vector<1x256xf32>, vector<1x256xf32> -> vector<1x512xf32>
    %c3 = arith.constant 3 : index
    %c0_16 = arith.constant 0 : index
    %36 = vector.load %arg14[%c3, %c0_16] : memref<10x512xf32, #tpu.memory_space<vmem>>, vector<1x512xf32>
    tpu.vector_store %arg14[%c3, %c0_16], %35 {strides = array<i32>} : memref<10x512xf32, #tpu.memory_space<vmem>>, vector<1x512xf32>,
    %37 = vector.extract_strided_slice %15 {offsets = [7, 0], sizes = [1, 256], strides = [1, 1]} : vector<8x256xf32> to vector<1x256xf32>
    %c4 = arith.constant 4 : index
    %c0_17 = arith.constant 0 : index
    %38 = vector.load %arg14[%c4, %c0_17] : memref<10x512xf32, #tpu.memory_space<vmem>>, vector<1x256xf32>
    tpu.vector_store %arg14[%c4, %c0_17], %37 {strides = array<i32>} : memref<10x512xf32, #tpu.memory_space<vmem>>, vector<1x256xf32>,
    %39 = vector.extract_strided_slice %22 {offsets = [0, 0], sizes = [1, 256], strides = [1, 1]} : vector<8x256xf32> to vector<1x256xf32>
    %c5 = arith.constant 5 : index
    %c256_18 = arith.constant 256 : index
    %40 = vector.load %arg14[%c5, %c256_18] : memref<10x512xf32, #tpu.memory_space<vmem>>, vector<1x256xf32>
    tpu.vector_store %arg14[%c5, %c256_18], %39 {strides = array<i32>} : memref<10x512xf32, #tpu.memory_space<vmem>>, vector<1x256xf32>,
    %41 = vector.extract_strided_slice %22 {offsets = [1, 0], sizes = [1, 256], strides = [1, 1]} : vector<8x256xf32> to vector<1x256xf32>
    %42 = vector.extract_strided_slice %22 {offsets = [2, 0], sizes = [1, 256], strides = [1, 1]} : vector<8x256xf32> to vector<1x256xf32>
    %43 = tpu.concatenate %41, %42 in 1 : vector<1x256xf32>, vector<1x256xf32> -> vector<1x512xf32>
    %c6 = arith.constant 6 : index
    %c0_19 = arith.constant 0 : index
    %44 = vector.load %arg14[%c6, %c0_19] : memref<10x512xf32, #tpu.memory_space<vmem>>, vector<1x512xf32>
    tpu.vector_store %arg14[%c6, %c0_19], %43 {strides = array<i32>} : memref<10x512xf32, #tpu.memory_space<vmem>>, vector<1x512xf32>,
    %45 = vector.extract_strided_slice %22 {offsets = [3, 0], sizes = [1, 256], strides = [1, 1]} : vector<8x256xf32> to vector<1x256xf32>
    %46 = vector.extract_strided_slice %22 {offsets = [4, 0], sizes = [1, 256], strides = [1, 1]} : vector<8x256xf32> to vector<1x256xf32>
    %47 = tpu.concatenate %45, %46 in 1 : vector<1x256xf32>, vector<1x256xf32> -> vector<1x512xf32>
    %c7 = arith.constant 7 : index
    %c0_20 = arith.constant 0 : index
    %48 = vector.load %arg14[%c7, %c0_20] : memref<10x512xf32, #tpu.memory_space<vmem>>, vector<1x512xf32>
    tpu.vector_store %arg14[%c7, %c0_20], %47 {strides = array<i32>} : memref<10x512xf32, #tpu.memory_space<vmem>>, vector<1x512xf32>,
    %49 = vector.extract_strided_slice %22 {offsets = [5, 0], sizes = [1, 256], strides = [1, 1]} : vector<8x256xf32> to vector<1x256xf32>
    %50 = vector.extract_strided_slice %22 {offsets = [6, 0], sizes = [1, 256], strides = [1, 1]} : vector<8x256xf32> to vector<1x256xf32>
    %51 = tpu.concatenate %49, %50 in 1 : vector<1x256xf32>, vector<1x256xf32> -> vector<1x512xf32>
    %c8 = arith.constant 8 : index
    %c0_21 = arith.constant 0 : index
    %52 = vector.load %arg14[%c8, %c0_21] : memref<10x512xf32, #tpu.memory_space<vmem>>, vector<1x512xf32>
    tpu.vector_store %arg14[%c8, %c0_21], %51 {strides = array<i32>} : memref<10x512xf32, #tpu.memory_space<vmem>>, vector<1x512xf32>,
    %53 = vector.extract_strided_slice %22 {offsets = [7, 0], sizes = [1, 256], strides = [1, 1]} : vector<8x256xf32> to vector<1x256xf32>
    %c9 = arith.constant 9 : index
    %c0_22 = arith.constant 0 : index
    %54 = vector.load %arg14[%c9, %c0_22] : memref<10x512xf32, #tpu.memory_space<vmem>>, vector<1x256xf32>
    tpu.vector_store %arg14[%c9, %c0_22], %53 {strides = array<i32>} : memref<10x512xf32, #tpu.memory_space<vmem>>, vector<1x256xf32>,
    %c0_23 = arith.constant 0 : index
    %c0_24 = arith.constant 0 : index
    %55 = vector.load %arg14[%c0_23, %c0_24] : memref<10x512xf32, #tpu.memory_space<vmem>>, vector<10x512xf32>
    %56 = arith.truncf %55 : vector<10x512xf32> to vector<10x512xbf16>
    %c0_25 = arith.constant 0 : index
    %c0_26 = arith.constant 0 : index
    %57 = vector.load %arg3[%c0_25, %c0_26] : memref<512x512xbf16, #tpu.memory_space<vmem>>, vector<512x512xbf16>
    %cst_27 = arith.constant dense<0.000000e+00> : vector<10x512xf32>
    %58 = tpu.matmul %56, %57, %cst_27 {dimension_numbers = #tpu.dot_dimension_numbers<[1], [0], [0], [1], [0, 0, 1, 1], [], []>} : vector<10x512xbf16>, vector<512x512xbf16>, vector<10x512xf32> -> vector<10x512xf32>
    %c0_28 = arith.constant 0 : index
    %c0_29 = arith.constant 0 : index
    %59 = vector.load %arg4[%c0_28, %c0_29] : memref<1x256xf32, #tpu.memory_space<vmem>>, vector<1x256xf32>
    %60 = vector.extract_strided_slice %58 {offsets = [0, 0], sizes = [4, 256], strides = [1, 1]} : vector<10x512xf32> to vector<4x256xf32>
    %61 = vector.extract_strided_slice %58 {offsets = [1, 256], sizes = [4, 256], strides = [1, 1]} : vector<10x512xf32> to vector<4x256xf32>
    %62 = arith.addf %60, %61 : vector<4x256xf32>
    %63 = vector.broadcast %59 : vector<1x256xf32> to vector<4x256xf32>
    %64 = arith.addf %62, %63 : vector<4x256xf32>
    %cst_30 = arith.constant 0.000000e+00 : f32
    %65 = vector.broadcast %cst_30 : f32 to vector<4x256xf32>
    %66 = arith.maximumf %64, %65 : vector<4x256xf32>
    %67 = vector.extract_strided_slice %58 {offsets = [5, 0], sizes = [4, 256], strides = [1, 1]} : vector<10x512xf32> to vector<4x256xf32>
    %68 = vector.extract_strided_slice %58 {offsets = [6, 256], sizes = [4, 256], strides = [1, 1]} : vector<10x512xf32> to vector<4x256xf32>
    %69 = arith.addf %67, %68 : vector<4x256xf32>
    %70 = vector.broadcast %59 : vector<1x256xf32> to vector<4x256xf32>
    %71 = arith.addf %69, %70 : vector<4x256xf32>
    %cst_31 = arith.constant 0.000000e+00 : f32
    %72 = vector.broadcast %cst_31 : f32 to vector<4x256xf32>
    %73 = arith.maximumf %71, %72 : vector<4x256xf32>
    %74 = vector.extract_strided_slice %66 {offsets = [0, 0], sizes = [1, 256], strides = [1, 1]} : vector<4x256xf32> to vector<1x256xf32>
    %c0_32 = arith.constant 0 : index
    %c256_33 = arith.constant 256 : index
    %75 = vector.load %arg15[%c0_32, %c256_33] : memref<6x512xf32, #tpu.memory_space<vmem>>, vector<1x256xf32>
    tpu.vector_store %arg15[%c0_32, %c256_33], %74 {strides = array<i32>} : memref<6x512xf32, #tpu.memory_space<vmem>>, vector<1x256xf32>,
    %76 = vector.extract_strided_slice %66 {offsets = [1, 0], sizes = [1, 256], strides = [1, 1]} : vector<4x256xf32> to vector<1x256xf32>
    %77 = vector.extract_strided_slice %66 {offsets = [2, 0], sizes = [1, 256], strides = [1, 1]} : vector<4x256xf32> to vector<1x256xf32>
    %78 = tpu.concatenate %76, %77 in 1 : vector<1x256xf32>, vector<1x256xf32> -> vector<1x512xf32>
    %c1_34 = arith.constant 1 : index
    %c0_35 = arith.constant 0 : index
    %79 = vector.load %arg15[%c1_34, %c0_35] : memref<6x512xf32, #tpu.memory_space<vmem>>, vector<1x512xf32>
    tpu.vector_store %arg15[%c1_34, %c0_35], %78 {strides = array<i32>} : memref<6x512xf32, #tpu.memory_space<vmem>>, vector<1x512xf32>,
    %80 = vector.extract_strided_slice %66 {offsets = [3, 0], sizes = [1, 256], strides = [1, 1]} : vector<4x256xf32> to vector<1x256xf32>
    %c2_36 = arith.constant 2 : index
    %c0_37 = arith.constant 0 : index
    %81 = vector.load %arg15[%c2_36, %c0_37] : memref<6x512xf32, #tpu.memory_space<vmem>>, vector<1x256xf32>
    tpu.vector_store %arg15[%c2_36, %c0_37], %80 {strides = array<i32>} : memref<6x512xf32, #tpu.memory_space<vmem>>, vector<1x256xf32>,
    %82 = vector.extract_strided_slice %73 {offsets = [0, 0], sizes = [1, 256], strides = [1, 1]} : vector<4x256xf32> to vector<1x256xf32>
    %c3_38 = arith.constant 3 : index
    %c256_39 = arith.constant 256 : index
    %83 = vector.load %arg15[%c3_38, %c256_39] : memref<6x512xf32, #tpu.memory_space<vmem>>, vector<1x256xf32>
    tpu.vector_store %arg15[%c3_38, %c256_39], %82 {strides = array<i32>} : memref<6x512xf32, #tpu.memory_space<vmem>>, vector<1x256xf32>,
    %84 = vector.extract_strided_slice %73 {offsets = [1, 0], sizes = [1, 256], strides = [1, 1]} : vector<4x256xf32> to vector<1x256xf32>
    %85 = vector.extract_strided_slice %73 {offsets = [2, 0], sizes = [1, 256], strides = [1, 1]} : vector<4x256xf32> to vector<1x256xf32>
    %86 = tpu.concatenate %84, %85 in 1 : vector<1x256xf32>, vector<1x256xf32> -> vector<1x512xf32>
    %c4_40 = arith.constant 4 : index
    %c0_41 = arith.constant 0 : index
    %87 = vector.load %arg15[%c4_40, %c0_41] : memref<6x512xf32, #tpu.memory_space<vmem>>, vector<1x512xf32>
    tpu.vector_store %arg15[%c4_40, %c0_41], %86 {strides = array<i32>} : memref<6x512xf32, #tpu.memory_space<vmem>>, vector<1x512xf32>,
    %88 = vector.extract_strided_slice %73 {offsets = [3, 0], sizes = [1, 256], strides = [1, 1]} : vector<4x256xf32> to vector<1x256xf32>
    %c5_42 = arith.constant 5 : index
    %c0_43 = arith.constant 0 : index
    %89 = vector.load %arg15[%c5_42, %c0_43] : memref<6x512xf32, #tpu.memory_space<vmem>>, vector<1x256xf32>
    tpu.vector_store %arg15[%c5_42, %c0_43], %88 {strides = array<i32>} : memref<6x512xf32, #tpu.memory_space<vmem>>, vector<1x256xf32>,
    %c0_44 = arith.constant 0 : index
    %c0_45 = arith.constant 0 : index
    %90 = vector.load %arg15[%c0_44, %c0_45] : memref<6x512xf32, #tpu.memory_space<vmem>>, vector<6x512xf32>
    %91 = arith.truncf %90 : vector<6x512xf32> to vector<6x512xbf16>
    %c0_46 = arith.constant 0 : index
    %c0_47 = arith.constant 0 : index
    %92 = vector.load %arg5[%c0_46, %c0_47] : memref<512x512xbf16, #tpu.memory_space<vmem>>, vector<512x512xbf16>
    %cst_48 = arith.constant dense<0.000000e+00> : vector<6x512xf32>
    %93 = tpu.matmul %91, %92, %cst_48 {dimension_numbers = #tpu.dot_dimension_numbers<[1], [0], [0], [1], [0, 0, 1, 1], [], []>} : vector<6x512xbf16>, vector<512x512xbf16>, vector<6x512xf32> -> vector<6x512xf32>
    %c0_49 = arith.constant 0 : index
    %c0_50 = arith.constant 0 : index
    %94 = vector.load %arg6[%c0_49, %c0_50] : memref<1x256xf32, #tpu.memory_space<vmem>>, vector<1x256xf32>
    %95 = vector.extract_strided_slice %93 {offsets = [0, 0], sizes = [2, 256], strides = [1, 1]} : vector<6x512xf32> to vector<2x256xf32>
    %96 = vector.extract_strided_slice %93 {offsets = [1, 256], sizes = [2, 256], strides = [1, 1]} : vector<6x512xf32> to vector<2x256xf32>
    %97 = arith.addf %95, %96 : vector<2x256xf32>
    %98 = vector.broadcast %94 : vector<1x256xf32> to vector<2x256xf32>
    %99 = arith.addf %97, %98 : vector<2x256xf32>
    %cst_51 = arith.constant 0.000000e+00 : f32
    %100 = vector.broadcast %cst_51 : f32 to vector<2x256xf32>
    %101 = arith.maximumf %99, %100 : vector<2x256xf32>
    %102 = vector.extract_strided_slice %93 {offsets = [3, 0], sizes = [2, 256], strides = [1, 1]} : vector<6x512xf32> to vector<2x256xf32>
    %103 = vector.extract_strided_slice %93 {offsets = [4, 256], sizes = [2, 256], strides = [1, 1]} : vector<6x512xf32> to vector<2x256xf32>
    %104 = arith.addf %102, %103 : vector<2x256xf32>
    %105 = vector.broadcast %94 : vector<1x256xf32> to vector<2x256xf32>
    %106 = arith.addf %104, %105 : vector<2x256xf32>
    %cst_52 = arith.constant 0.000000e+00 : f32
    %107 = vector.broadcast %cst_52 : f32 to vector<2x256xf32>
    %108 = arith.maximumf %106, %107 : vector<2x256xf32>
    %cst_53 = arith.constant dense<0.000000e+00> : vector<256xf32>
    %109 = vector.multi_reduction <add>, %101, %cst_53 [0] : vector<2x256xf32> to vector<256xf32>
    %110 = vector.shape_cast %109 : vector<256xf32> to vector<1x256xf32>
    %111 = vector.extract_strided_slice %110 {offsets = [0, 0], sizes = [1, 128], strides = [1, 1]} : vector<1x256xf32> to vector<1x128xf32>
    %112 = vector.extract_strided_slice %110 {offsets = [0, 128], sizes = [1, 128], strides = [1, 1]} : vector<1x256xf32> to vector<1x128xf32>
    %113 = arith.addf %111, %112 : vector<1x128xf32>
    %cst_54 = arith.constant 2.500000e-01 : f32
    %114 = vector.broadcast %cst_54 : f32 to vector<1x128xf32>
    %115 = arith.mulf %113, %114 : vector<1x128xf32>
    %cst_55 = arith.constant dense<0.000000e+00> : vector<256xf32>
    %116 = vector.multi_reduction <add>, %108, %cst_55 [0] : vector<2x256xf32> to vector<256xf32>
    %117 = vector.shape_cast %116 : vector<256xf32> to vector<1x256xf32>
    %118 = vector.extract_strided_slice %117 {offsets = [0, 0], sizes = [1, 128], strides = [1, 1]} : vector<1x256xf32> to vector<1x128xf32>
    %119 = vector.extract_strided_slice %117 {offsets = [0, 128], sizes = [1, 128], strides = [1, 1]} : vector<1x256xf32> to vector<1x128xf32>
    %120 = arith.addf %118, %119 : vector<1x128xf32>
    %cst_56 = arith.constant 2.500000e-01 : f32
    %121 = vector.broadcast %cst_56 : f32 to vector<1x128xf32>
    %122 = arith.mulf %120, %121 : vector<1x128xf32>
    %123 = tpu.concatenate %115, %122 in 0 : vector<1x128xf32>, vector<1x128xf32> -> vector<2x128xf32>
    %124 = arith.truncf %123 : vector<2x128xf32> to vector<2x128xbf16>
    %c0_57 = arith.constant 0 : index
    %c0_58 = arith.constant 0 : index
    %125 = vector.load %arg7[%c0_57, %c0_58] : memref<128x512xbf16, #tpu.memory_space<vmem>>, vector<128x512xbf16>
    %cst_59 = arith.constant dense<0.000000e+00> : vector<2x512xf32>
    %126 = tpu.matmul %124, %125, %cst_59 {dimension_numbers = #tpu.dot_dimension_numbers<[1], [0], [0], [1], [0, 0, 1, 1], [], []>} : vector<2x128xbf16>, vector<128x512xbf16>, vector<2x512xf32> -> vector<2x512xf32>
    %c0_60 = arith.constant 0 : index
    %c0_61 = arith.constant 0 : index
    %127 = vector.load %arg8[%c0_60, %c0_61] : memref<1x512xf32, #tpu.memory_space<vmem>>, vector<1x512xf32>
    %128 = vector.broadcast %127 : vector<1x512xf32> to vector<2x512xf32>
    %129 = arith.addf %126, %128 : vector<2x512xf32>
    %cst_62 = arith.constant 0.000000e+00 : f32
    %130 = vector.broadcast %cst_62 : f32 to vector<2x512xf32>
    %131 = arith.maximumf %129, %130 : vector<2x512xf32>
    %132 = arith.truncf %131 : vector<2x512xf32> to vector<2x512xbf16>
    %c0_63 = arith.constant 0 : index
    %c0_64 = arith.constant 0 : index
    %133 = vector.load %arg9[%c0_63, %c0_64] : memref<512x64xbf16, #tpu.memory_space<vmem>>, vector<512x64xbf16>
    %cst_65 = arith.constant dense<0.000000e+00> : vector<2x64xf32>
    %134 = tpu.matmul %132, %133, %cst_65 {dimension_numbers = #tpu.dot_dimension_numbers<[1], [0], [0], [1], [0, 0, 1, 1], [], []>} : vector<2x512xbf16>, vector<512x64xbf16>, vector<2x64xf32> -> vector<2x64xf32>
    %c0_66 = arith.constant 0 : index
    %c0_67 = arith.constant 0 : index
    %135 = vector.load %arg10[%c0_66, %c0_67] : memref<1x64xf32, #tpu.memory_space<vmem>>, vector<1x64xf32>
    %136 = vector.broadcast %135 : vector<1x64xf32> to vector<2x64xf32>
    %137 = arith.addf %134, %136 : vector<2x64xf32>
    %cst_68 = arith.constant 0.000000e+00 : f32
    %138 = vector.broadcast %cst_68 : f32 to vector<2x64xf32>
    %139 = arith.maximumf %137, %138 : vector<2x64xf32>
    %140 = arith.truncf %139 : vector<2x64xf32> to vector<2x64xbf16>
    %c0_69 = arith.constant 0 : index
    %c0_70 = arith.constant 0 : index
    %141 = vector.load %arg11[%c0_69, %c0_70] : memref<64x128xbf16, #tpu.memory_space<vmem>>, vector<64x128xbf16>
    %cst_71 = arith.constant dense<0.000000e+00> : vector<2x128xf32>
    %142 = tpu.matmul %140, %141, %cst_71 {dimension_numbers = #tpu.dot_dimension_numbers<[1], [0], [0], [1], [0, 0, 1, 1], [], []>} : vector<2x64xbf16>, vector<64x128xbf16>, vector<2x128xf32> -> vector<2x128xf32>
    %c0_72 = arith.constant 0 : index
    %c0_73 = arith.constant 0 : index
    %143 = vector.load %arg12[%c0_72, %c0_73] : memref<1x128xf32, #tpu.memory_space<vmem>>, vector<1x128xf32>
    %144 = vector.broadcast %143 : vector<1x128xf32> to vector<2x128xf32>
    %145 = arith.addf %142, %144 : vector<2x128xf32>
    %cst_74 = arith.constant dense<0xFF800000> : vector<2xf32>
    %146 = vector.multi_reduction <maximumf>, %145, %cst_74 [1] : vector<2x128xf32> to vector<2xf32>
    %147 = vector.shape_cast %146 : vector<2xf32> to vector<2x1xf32>
    %148 = vector.broadcast %147 : vector<2x1xf32> to vector<2x128xf32>
    %149 = arith.subf %145, %148 : vector<2x128xf32>
    %150 = math.exp %149 : vector<2x128xf32>
    %cst_75 = arith.constant dense<0.000000e+00> : vector<2xf32>
    %151 = vector.multi_reduction <add>, %150, %cst_75 [1] : vector<2x128xf32> to vector<2xf32>
    %152 = vector.shape_cast %151 : vector<2xf32> to vector<2x1xf32>
    %153 = vector.broadcast %152 : vector<2x1xf32> to vector<2x128xf32>
    %154 = arith.divf %150, %153 : vector<2x128xf32>
    %c0_76 = arith.constant 0 : index
    %c0_77 = arith.constant 0 : index
    %155 = vector.load %arg13[%c0_76, %c0_77] : memref<2x128xf32, #tpu.memory_space<vmem>>, vector<2x128xf32>
    tpu.vector_store %arg13[%c0_76, %c0_77], %154 {strides = array<i32>} : memref<2x128xf32, #tpu.memory_space<vmem>>, vector<2x128xf32>,
    return
  }
}

</mosaic_0001>

<bundles_post_ra>
// kernel: model_forward.1
= control target key start
LH: loop header
LB: loop body
LE: loop exit
PB: predicated region body
PF: predicated region fallthrough
CT: control target
= control target key end

     0   :  { %v4412_v2 = vmov 0   ;;  %vm207_vm0 = vcmask 785408   ;;  %s5713_s0 = inlined_call_operand.vmem [shape: f32[18,96], index: 0, kind: input, shape index: {}]   ;;  %s5714_s1 = inlined_call_operand.vmem [shape: bf16[96,512], index: 1, kind: input, shape index: {}]   ;;  %s5715_s2 = inlined_call_operand.vmem [shape: f32[1,256], index: 2, kind: input, shape index: {}]   ;;  %s5716_s3 = inlined_call_operand.vmem [shape: bf16[512,512], index: 3, kind: input, shape index: {}]   ;;  %s5717_s4 = inlined_call_operand.vmem [shape: f32[1,256], index: 4, kind: input, shape index: {}]   ;;  %s5718_s5 = inlined_call_operand.vmem [shape: bf16[512,512], index: 5, kind: input, shape index: {}]   ;;  %s5719_s6 = inlined_call_operand.vmem [shape: f32[1,256], index: 6, kind: input, shape index: {}]   ;;  %s5720_s7 = inlined_call_operand.vmem [shape: bf16[128,512], index: 7, kind: input, shape index: {}]   ;;  %s5721_s8 = inlined_call_operand.vmem [shape: f32[1,512], index: 8, kind: input, shape index: {}]   ;;  %s5722_s9 = inlined_call_operand.vmem [shape: bf16[512,64], index: 9, kind: input, shape index: {}]   ;;  %s5723_s10 = inlined_call_operand.vmem [shape: f32[1,64], index: 10, kind: input, shape index: {}]   ;;  %s5724_s11 = inlined_call_operand.vmem [shape: bf16[64,128], index: 11, kind: input, shape index: {}]   ;;  %s5725_s12 = inlined_call_operand.vmem [shape: f32[1,128], index: 12, kind: input, shape index: {}]   ;;  %s5726_s13 = inlined_call_operand.hbm [shape: f32[2,128], index: 13, kind: output, shape index: {}]  }
   0x1   :  { %v3880_v0 = vld [vmem:[%s5714_s1 + $0xc] ss:$16 sps:$4 sm:$0xff]   ;;  %v3882_v1 = vld [vmem:[%s5714_s1 + $0x8] ss:$16 sps:$4 sm:$0xff]   ;;  %297 = vmatprep.mubr.bf16.mxu1 %v4412_v2  ;;  %246 = vmatprep.mubr.bf16.mxu0 %v4412_v2  ;;  %v3883_v3 = vld [vmem:[%s5714_s1 + $0x4] ss:$16 sps:$4 sm:$0xff]  }
   0x2   :  { %265 = vmatprep.subr.bf16.mxu1 %v3880_v0  ;;  %v3885_v4 = vld [vmem:[%s5714_s1] ss:$16 sps:$4 sm:$0xff]   ;;  %v3886_v5 = vld [vmem:[%s5714_s1 + $0x2c] ss:$16 sps:$4 sm:$0xff]   ;;  %v3888_v6 = vld [vmem:[%s5714_s1 + $0x28] ss:$16 sps:$4 sm:$0xff]   ;;  %214 = vmatprep.subr.bf16.mxu0 %v3883_v3 }
   0x3   :  { %266 = vmatpush1.bf16.msra.mxu1 %v3882_v1  ;;  %v3889_v7 = vld [vmem:[%s5714_s1 + $0x24] ss:$16 sps:$4 sm:$0xff]   ;;  %215 = vmatpush1.bf16.msra.mxu0 %v3885_v4  ;;  %v3891_v8 = vld [vmem:[%s5714_s1 + $0x20] ss:$16 sps:$4 sm:$0xff]   ;;  %v3892_v9 = vld [vmem:[%s5714_s1 + $0x4c] ss:$16 sps:$4 sm:$0xff]  }
   0x4   :  { %267 = vmatprep.subr.bf16.mxu1 %v3886_v5  ;;  %216 = vmatprep.subr.bf16.mxu0 %v3889_v7  ;;  %v3894_v10 = vld [vmem:[%s5714_s1 + $0x48] ss:$16 sps:$4 sm:$0xff]   ;;  %v3895_v11 = vld [vmem:[%s5714_s1 + $0x44] ss:$16 sps:$4 sm:$0xff]   ;;  %v3898_v12 = vld [vmem:[%s5714_s1 + $0x6c] ss:$16 sps:$4 sm:$0xff]  }
   0x5   :  { %v3897_v13 = vld [vmem:[%s5714_s1 + $0x40] ss:$16 sps:$4 sm:$0xff]   ;;  %v3901_v14 = vld [vmem:[%s5714_s1 + $0x64] ss:$16 sps:$4 sm:$0xff]   ;;  %v3900_v15 = vld [vmem:[%s5714_s1 + $0x68] ss:$16 sps:$4 sm:$0xff]  }
   0x6   :  { %v3904_v16 = vld [vmem:[%s5714_s1 + $0x8c] ss:$16 sps:$4 sm:$0xff]   ;;  %v3903_v17 = vld [vmem:[%s5714_s1 + $0x60] ss:$16 sps:$4 sm:$0xff]   ;;  %v3907_v18 = vld [vmem:[%s5714_s1 + $0x84] ss:$16 sps:$4 sm:$0xff]  }
   0x7   :  { %268 = vmatpush1.bf16.msra.mxu1 %v3888_v6  ;;  %217 = vmatpush1.bf16.msra.mxu0 %v3891_v8  ;;  %v3906_v19 = vld [vmem:[%s5714_s1 + $0x88] ss:$16 sps:$4 sm:$0xff]   ;;  %v3909_v20 = vld [vmem:[%s5714_s1 + $0x80] ss:$16 sps:$4 sm:$0xff]   ;;  %v3910_v21 = vld [vmem:[%s5714_s1 + $0xac] ss:$16 sps:$4 sm:$0xff]  }
   0x8   :  { %269 = vmatprep.subr.bf16.mxu1 %v3892_v9  ;;  %218 = vmatprep.subr.bf16.mxu0 %v3895_v11  ;;  %v3912_v22 = vld [vmem:[%s5714_s1 + $0xa8] ss:$16 sps:$4 sm:$0xff]   ;;  %v3913_v23 = vld [vmem:[%s5714_s1 + $0xa4] ss:$16 sps:$4 sm:$0xff]   ;;  %v3921_v26 = vld [vmem:[%s5716_s3 + $0xc] ss:$16 sps:$4 sm:$0xff]  }
   0x9   :  { %v58_v24 = vld [vmem:[%s5713_s0] sm:$0xff]  ;;  %v59_v25 = vld [vmem:[%s5713_s0 + $0x8] sm:$0xff]  ;;  %v60_v34 = vld [vmem:[%s5713_s0 + $0x10] sm:$0x3]  ;;  %v4413_v5 = vmov 0.0  }
   0xa   :  { %v3915_v27 = vld [vmem:[%s5714_s1 + $0xa0] ss:$16 sps:$4 sm:$0xff]   ;;  %v61_v28 = vpack.c.bf16 %v59_v25, %v58_v24  ;;  %v3918_v29 = vld [vmem:[%s5716_s3 + $0x4] ss:$16 sps:$4 sm:$0xff]   ;;  %v3919_v30 = vld [vmem:[%s5716_s3 + $0x8] ss:$16 sps:$4 sm:$0xff]   ;;  %v62_v38 = vpack.c.bf16 %v60_v34, %v60_v34 }
   0xb   :  { %270 = vmatpush1.bf16.msra.mxu1 %v3894_v10  ;;  %219 = vmatpush1.bf16.msra.mxu0 %v3897_v13  ;;  %v3927_v31 = vld [vmem:[%s5716_s3 + $0x2c] ss:$16 sps:$4 sm:$0xff]   ;;  %v3916_v32 = vld [vmem:[%s5716_s3] ss:$16 sps:$4 sm:$0xff]   ;;  %v3924_v33 = vld [vmem:[%s5716_s3 + $0x24] ss:$16 sps:$4 sm:$0xff]  }
   0xc   :  { %271 = vmatprep.subr.bf16.mxu1 %v3898_v12  ;;  %220 = vmatprep.subr.bf16.mxu0 %v3901_v14  ;;  %v3925_v35 = vld [vmem:[%s5716_s3 + $0x28] ss:$16 sps:$4 sm:$0xff]   ;;  %v3933_v36 = vld [vmem:[%s5716_s3 + $0x4c] ss:$16 sps:$4 sm:$0xff]   ;;  %v3922_v37 = vld [vmem:[%s5716_s3 + $0x20] ss:$16 sps:$4 sm:$0xff]  }
   0xd   :  { %v3930_v39 = vld [vmem:[%s5716_s3 + $0x44] ss:$16 sps:$4 sm:$0xff]   ;;  %v3928_v40 = vld [vmem:[%s5716_s3 + $0x40] ss:$16 sps:$4 sm:$0xff]   ;;  %v3931_v41 = vld [vmem:[%s5716_s3 + $0x48] ss:$16 sps:$4 sm:$0xff]  }
   0xe   :  { %v3936_v42 = vld [vmem:[%s5716_s3 + $0x64] ss:$16 sps:$4 sm:$0xff]   ;;  %v3939_v43 = vld [vmem:[%s5716_s3 + $0x6c] ss:$16 sps:$4 sm:$0xff]   ;;  %v3937_v44 = vld [vmem:[%s5716_s3 + $0x68] ss:$16 sps:$4 sm:$0xff]  }
   0xf   :  { %272 = vmatpush1.bf16.msra.mxu1 %v3900_v15  ;;  %221 = vmatpush1.bf16.msra.mxu0 %v3903_v17  ;;  %v3945_v45 = vld [vmem:[%s5716_s3 + $0x8c] ss:$16 sps:$4 sm:$0xff]   ;;  %v3934_v46 = vld [vmem:[%s5716_s3 + $0x60] ss:$16 sps:$4 sm:$0xff]   ;;  %v3942_v47 = vld [vmem:[%s5716_s3 + $0x84] ss:$16 sps:$4 sm:$0xff]  }
  0x10   :  { %273 = vmatprep.subr.bf16.mxu1 %v3904_v16  ;;  %222 = vmatprep.subr.bf16.mxu0 %v3907_v18  ;;  %v3943_v48 = vld [vmem:[%s5716_s3 + $0x88] ss:$16 sps:$4 sm:$0xff]   ;;  %v3951_v49 = vld [vmem:[%s5716_s3 + $0xac] ss:$16 sps:$4 sm:$0xff]   ;;  %v3940_v50 = vld [vmem:[%s5716_s3 + $0x80] ss:$16 sps:$4 sm:$0xff]  }
  0x11   :  { %v3948_v51 = vld [vmem:[%s5716_s3 + $0xa4] ss:$16 sps:$4 sm:$0xff]   ;;  %v3949_v52 = vld [vmem:[%s5716_s3 + $0xa8] ss:$16 sps:$4 sm:$0xff]   ;;  %v3946_v53 = vld [vmem:[%s5716_s3 + $0xa0] ss:$16 sps:$4 sm:$0xff]  }
  0x12   :  { %v3954_v54 = vld [vmem:[%s5716_s3 + $0xc4] ss:$16 sps:$4 sm:$0xff]   ;;  %v3957_v55 = vld [vmem:[%s5716_s3 + $0xcc] ss:$16 sps:$4 sm:$0xff]   ;;  %v3952_v56 = vld [vmem:[%s5716_s3 + $0xc0] ss:$16 sps:$4 sm:$0xff]  }
  0x13   :  { %274 = vmatpush1.bf16.msra.mxu1 %v3906_v19  ;;  %223 = vmatpush1.bf16.msra.mxu0 %v3909_v20  ;;  %v3955_v57 = vld [vmem:[%s5716_s3 + $0xc8] ss:$16 sps:$4 sm:$0xff]   ;;  %v3960_v58 = vld [vmem:[%s5716_s3 + $0xe4] ss:$16 sps:$4 sm:$0xff]   ;;  %v3963_v59 = vld [vmem:[%s5716_s3 + $0xec] ss:$16 sps:$4 sm:$0xff]  }
  0x14   :  { %275 = vmatprep.subr.bf16.mxu1 %v3910_v21  ;;  %224 = vmatprep.subr.bf16.mxu0 %v3913_v23  ;;  %v3958_v60 = vld [vmem:[%s5716_s3 + $0xe0] ss:$16 sps:$4 sm:$0xff]   ;;  %v3961_v61 = vld [vmem:[%s5716_s3 + $0xe8] ss:$16 sps:$4 sm:$0xff]   ;;  %v3966_v62 = vld [vmem:[%s5716_s3 + $0x104] ss:$16 sps:$4 sm:$0xff]  }
  0x15   :  { %v3969_v63 = vld [vmem:[%s5716_s3 + $0x10c] ss:$16 sps:$4 sm:$0xff]   ;;  %v3964_v0 = vld [vmem:[%s5716_s3 + $0x100] ss:$16 sps:$4 sm:$0xff]   ;;  %v3967_v1 = vld [vmem:[%s5716_s3 + $0x108] ss:$16 sps:$4 sm:$0xff]  }
  0x16   :  { %v3972_v3 = vld [vmem:[%s5716_s3 + $0x124] ss:$16 sps:$4 sm:$0xff]   ;;  %v3975_v4 = vld [vmem:[%s5716_s3 + $0x12c] ss:$16 sps:$4 sm:$0xff]   ;;  %46 = vst [vmem:[#allocation2] sm:$0xff] %v4413_v5  ;;  %47 = vst [vmem:[#allocation2 + $0x8] sm:$0xff] %v4413_v5 }
  0x17   :  { %276 = vmatpush1.bf16.msra.mxu1 %v3912_v22  ;;  %225 = vmatpush1.bf16.msra.mxu0 %v3915_v27  ;;  %48 = vst [vmem:[#allocation2 + $0x10] sm:$0xff] %v4413_v5  ;;  %49 = vst [vmem:[#allocation2 + $0x18] sm:$0xff] %v4413_v5  ;;  %v3970_v6 = vld [vmem:[%s5716_s3 + $0x120] ss:$16 sps:$4 sm:$0xff]   ;;  %v3973_v7 = vld [vmem:[%s5716_s3 + $0x128] ss:$16 sps:$4 sm:$0xff]  }
  0x18   :  { %1429 = vmatprep.subr.bf16.mxu1 %v3921_v26  ;;  %1343 = vmatprep.subr.bf16.mxu0 %v3918_v29  ;;  %50 = vst [vmem:[#allocation2 + $0x20] sm:$0x3] %v4413_v5  ;;  %51 = vst [vmem:[#allocation2 + $0x28] sm:$0x3] %v4413_v5  ;;  %v3978_v8 = vld [vmem:[%s5716_s3 + $0x144] ss:$16 sps:$4 sm:$0xff]  }
  0x19   :  { %52 = vst [vmem:[#allocation2 + $0x30] sm:$0x3] %v4413_v5  ;;  %53 = vst [vmem:[#allocation2 + $0x38] sm:$0x3] %v4413_v5  ;;  %v3981_v9 = vld [vmem:[%s5716_s3 + $0x14c] ss:$16 sps:$4 sm:$0xff]  }
  0x1a   :  { %3473 = vmatmul.mubr.msk.bf16.vlgmr.msra.gmra.mrb[0].mxu1 %vm207_vm0, %v61_v28  ;;  %3471 = vmatmul.mubr.msk.bf16.vlgmr.msra.gmra.mrb[0].mxu0 %vm207_vm0, %v61_v28  ;;  %54 = vst [vmem:[#allocation3] sm:$0x3f] %v4413_v5  ;;  %55 = vst [vmem:[#allocation3 + $0x8] sm:$0x3f] %v4413_v5  ;;  %v3976_v10 = vld [vmem:[%s5716_s3 + $0x140] ss:$16 sps:$4 sm:$0xff]  }
  0x1b   :  { %307 = vmatprep.mubr.bf16.mxu1 %v4412_v2  ;;  %1430 = vmatpush1.bf16.msra.mxu1 %v3919_v30  ;;  %56 = vst [vmem:[#allocation3 + $0x10] sm:$0x3f] %v4413_v5  ;;  %57 = vst [vmem:[#allocation3 + $0x18] sm:$0x3f] %v4413_v5  ;;  %v3979_v11 = vld [vmem:[%s5716_s3 + $0x148] ss:$16 sps:$4 sm:$0xff]  }
  0x1c   :  { %1431 = vmatprep.subr.bf16.mxu1 %v3927_v31  ;;  %256 = vmatprep.mubr.bf16.mxu0 %v4412_v2  ;;  %v3984_v12 = vld [vmem:[%s5716_s3 + $0x164] ss:$16 sps:$4 sm:$0xff]   ;;  %v3987_v13 = vld [vmem:[%s5716_s3 + $0x16c] ss:$16 sps:$4 sm:$0xff]   ;;  %v3982_v14 = vld [vmem:[%s5716_s3 + $0x160] ss:$16 sps:$4 sm:$0xff]  }
  0x1d   :  { %1344 = vmatpush1.bf16.msra.mxu0 %v3916_v32  ;;  %v3985_v15 = vld [vmem:[%s5716_s3 + $0x168] ss:$16 sps:$4 sm:$0xff]   ;;  %v3990_v16 = vld [vmem:[%s5716_s3 + $0x184] ss:$16 sps:$4 sm:$0xff]   ;;  %v3993_v17 = vld [vmem:[%s5716_s3 + $0x18c] ss:$16 sps:$4 sm:$0xff]  }
  0x1e   :  { %1345 = vmatprep.subr.bf16.mxu0 %v3924_v33  ;;  %v3988_v18 = vld [vmem:[%s5716_s3 + $0x180] ss:$16 sps:$4 sm:$0xff]   ;;  %v3991_v19 = vld [vmem:[%s5716_s3 + $0x188] ss:$16 sps:$4 sm:$0xff]   ;;  %v3996_v20 = vld [vmem:[%s5716_s3 + $0x1a4] ss:$16 sps:$4 sm:$0xff]  }
  0x1f   :  { %1432 = vmatpush1.bf16.msra.mxu1 %v3925_v35  ;;  %v3999_v21 = vld [vmem:[%s5716_s3 + $0x1ac] ss:$16 sps:$4 sm:$0xff]   ;;  %v3994_v22 = vld [vmem:[%s5716_s3 + $0x1a0] ss:$16 sps:$4 sm:$0xff]   ;;  %v3997_v23 = vld [vmem:[%s5716_s3 + $0x1a8] ss:$16 sps:$4 sm:$0xff]  }
  0x20   :  { %1433 = vmatprep.subr.bf16.mxu1 %v3933_v36  ;;  %v4000_v24 = vld [vmem:[%s5716_s3 + $0x1c0] ss:$16 sps:$4 sm:$0xff]   ;;  %v4002_v25 = vld [vmem:[%s5716_s3 + $0x1c4] ss:$16 sps:$4 sm:$0xff]   ;;  %v4003_v26 = vld [vmem:[%s5716_s3 + $0x1c8] ss:$16 sps:$4 sm:$0xff]  }
  0x21   :  { %1346 = vmatpush1.bf16.msra.mxu0 %v3922_v37  ;;  %v4005_v27 = vld [vmem:[%s5716_s3 + $0x1cc] ss:$16 sps:$4 sm:$0xff]   ;;  %v4006_v28 = vld [vmem:[%s5716_s3 + $0x1e0] ss:$16 sps:$4 sm:$0xff]   ;;  %v4008_v29 = vld [vmem:[%s5716_s3 + $0x1e4] ss:$16 sps:$4 sm:$0xff]  }
  0x22   :  { %3474 = vmatmul.mubr.msk.bf16.gmra.mrb[4].mxu1 %vm207_vm0, %v62_v38  ;;  %1347 = vmatprep.subr.bf16.mxu0 %v3930_v39  ;;  %v4009_v30 = vld [vmem:[%s5716_s3 + $0x1e8] ss:$16 sps:$4 sm:$0xff]   ;;  %v4011_v31 = vld [vmem:[%s5716_s3 + $0x1ec] ss:$16 sps:$4 sm:$0xff]   ;;  %v4014_v32 = vld [vmem:[%s5716_s3 + $0x204] ss:$16 sps:$4 sm:$0xff]  }
  0x23   :  { %1434 = vmatpush1.bf16.msra.mxu1 %v3931_v41  ;;  %3472 = vmatmul.mubr.msk.bf16.gmra.mrb[4].mxu0 %vm207_vm0, %v62_v38  ;;  %v4017_v33 = vld [vmem:[%s5716_s3 + $0x20c] ss:$16 sps:$4 sm:$0xff]  }
  0x24   :  { %1435 = vmatprep.subr.bf16.mxu1 %v3939_v43 }
  0x25   :  { %1348 = vmatpush1.bf16.msra.mxu0 %v3928_v40 }
  0x26   :  { %1349 = vmatprep.subr.bf16.mxu0 %v3936_v42 }
  0x27   :  { %1436 = vmatpush1.bf16.msra.mxu1 %v3937_v44 }
  0x28   :  { %1437 = vmatprep.subr.bf16.mxu1 %v3945_v45 }
  0x29   :  { %1350 = vmatpush1.bf16.msra.mxu0 %v3934_v46 }
  0x2a   :  { %1351 = vmatprep.subr.bf16.mxu0 %v3942_v47 }
  0x2b   :  { %1438 = vmatpush1.bf16.msra.mxu1 %v3943_v48 }
  0x2c   :  { %1439 = vmatprep.subr.bf16.mxu1 %v3951_v49 }
  0x2d   :  { %1352 = vmatpush1.bf16.msra.mxu0 %v3940_v50 }
  0x2e   :  { %1353 = vmatprep.subr.bf16.mxu0 %v3948_v51 }
  0x2f   :  { %1440 = vmatpush1.bf16.msra.mxu1 %v3949_v52 }
  0x30   :  { %1441 = vmatprep.subr.bf16.mxu1 %v3957_v55 }
  0x31   :  { %1354 = vmatpush1.bf16.msra.mxu0 %v3946_v53 }
  0x32   :  { %1355 = vmatprep.subr.bf16.mxu0 %v3954_v54 }
  0x33   :  { %1442 = vmatpush1.bf16.msra.mxu1 %v3955_v57 }
  0x34   :  { %1443 = vmatprep.subr.bf16.mxu1 %v3963_v59 }
  0x35   :  { %1356 = vmatpush1.bf16.msra.mxu0 %v3952_v56 }
  0x36   :  { %1357 = vmatprep.subr.bf16.mxu0 %v3960_v58 }
  0x37   :  { %1444 = vmatpush1.bf16.msra.mxu1 %v3961_v61 }
  0x38   :  { %1445 = vmatprep.subr.bf16.mxu1 %v3969_v63 }
  0x39   :  { %1358 = vmatpush1.bf16.msra.mxu0 %v3958_v60 }
  0x3a   :  { %1359 = vmatprep.subr.bf16.mxu0 %v3966_v62 }
  0x3b   :  { %1446 = vmatpush1.bf16.msra.mxu1 %v3967_v1 }
  0x3c   :  { %1447 = vmatprep.subr.bf16.mxu1 %v3975_v4 }
  0x3d   :  { %1360 = vmatpush1.bf16.msra.mxu0 %v3964_v0 }
  0x3e   :  { %1361 = vmatprep.subr.bf16.mxu0 %v3972_v3 }
  0x3f   :  { %1448 = vmatpush1.bf16.msra.mxu1 %v3973_v7 }
  0x40   :  { %1449 = vmatprep.subr.bf16.mxu1 %v3981_v9 }
  0x41   :  { %1362 = vmatpush1.bf16.msra.mxu0 %v3970_v6 }
  0x42   :  { %1363 = vmatprep.subr.bf16.mxu0 %v3978_v8 }
  0x43   :  { %1450 = vmatpush1.bf16.msra.mxu1 %v3979_v11 }
  0x44   :  { %1451 = vmatprep.subr.bf16.mxu1 %v3987_v13 }
  0x45   :  { %1364 = vmatpush1.bf16.msra.mxu0 %v3976_v10 }
  0x46   :  { %1365 = vmatprep.subr.bf16.mxu0 %v3984_v12 }
  0x47   :  { %1452 = vmatpush1.bf16.msra.mxu1 %v3985_v15 }
  0x48   :  { %1453 = vmatprep.subr.bf16.mxu1 %v3993_v17 }
  0x49   :  { %1366 = vmatpush1.bf16.msra.mxu0 %v3982_v14 }
  0x4a   :  { %1367 = vmatprep.subr.bf16.mxu0 %v3990_v16 }
  0x4b   :  { %1454 = vmatpush1.bf16.msra.mxu1 %v3991_v19 }
  0x4c   :  { %1455 = vmatprep.subr.bf16.mxu1 %v3999_v21 }
  0x4d   :  { %1368 = vmatpush1.bf16.msra.mxu0 %v3988_v18 }
  0x4e   :  { %1369 = vmatprep.subr.bf16.mxu0 %v3996_v20 }
  0x4f   :  { %1456 = vmatpush1.bf16.msra.mxu1 %v3997_v23 }
  0x50   :  { %1457 = vmatprep.subr.bf16.mxu1 %v4005_v27 }
  0x51   :  { %1370 = vmatpush1.bf16.msra.mxu0 %v3994_v22 }
  0x52   :  { %1371 = vmatprep.subr.bf16.mxu0 %v4002_v25 }
  0x53   :  { %1458 = vmatpush1.bf16.msra.mxu1 %v4003_v26 }
  0x54   :  { %1459 = vmatprep.subr.bf16.mxu1 %v4011_v31 }
  0x55   :  { %1372 = vmatpush1.bf16.msra.mxu0 %v4000_v24 }
  0x56   :  { %1373 = vmatprep.subr.bf16.mxu0 %v4008_v29 }
  0x57   :  { %1460 = vmatpush1.bf16.msra.mxu1 %v4009_v30 }
  0x58   :  { %1472 = vmatprep.subr.bf16.mxu1 %v4017_v33 }
  0x59   :  { %1374 = vmatpush1.bf16.msra.mxu0 %v4006_v28 }
  0x5a   :  { %1386 = vmatprep.subr.bf16.mxu0 %v4014_v32 }
  0x5b   :  { %18 = vsyncpa [#allocation5], 0  ;;  %v333_v34 = vlaneseq  ;;  %v316_v39 = vld [vmem:[%s5715_s2] sm:$0x3]  ;;  %vm321_vm1 = vcmask 1046528   ;;  %vm2647_vm4 = vcmask 1041408  }
  0x5c   :  { %v4414_v46 = vmov 1966171168   ;;  %vm2686_vm5 = vcmask 1040384   ;;  %vm4415_vm6 = vmmov 0   ;;  %vm3377_vm7 = vcmask 523264  }
  0x5d   :  { %v4787_v35 = vshrl.u32 %v333_v34, 7  ;;  %v373_v47 = vunpack.c.l.s4 %v4414_v46  ;;  %vm4808_vm2 = vcmp.lt.s32.totalorder %v333_v34, 256  ;;  %vm4818_vm3 = vcmp.lt.s32.totalorder %v333_v34, 512  ;;  %v4207_v46 = vld [vmem:[%s5718_s5 + $0x28] ss:$16 sps:$4 sm:$0xff]  }
  0x5f   :  { %v4790_v37 = vsub.s32 0, %v4787_v35  ;;  %v4796_v40 = vsub.s32 1, %v4787_v35  ;;  %v374_v58 = vunpack.c.0.s8 %v373_v47 }
  0x61   :  { %v336_v51 = vrot.slane %v316_v39, %v4790_v37  ;;  %v340_v54 = vrot.slane %v316_v39, %v4796_v40  ;;  %v4803_v7 = vsub.s32 %v374_v58, %v4787_v35 }
  0xed   :  { %v299_v36 = vpop.f32.mrb[0].mxu1  ;;  %v248_v42 = vpop.f32.mrb[0].mxu0 }
  0xee   :  { %v301_v38 = vpop.f32.mrb[1].mxu1  ;;  %v322_v43 = vrot.slane %v299_v36, 1  ;;  %v250_v48 = vpop.f32.mrb[1].mxu0 }
  0xef   :  { %v303_v41 = vpop.f32.mrb[2].mxu1  ;;  %v325_v49 = vrot.slane %v301_v38, 1  ;;  %v252_v52 = vpop.f32.mrb[2].mxu0 }
  0xf0   :  { %v323_v44 = vrot.slane %v303_v41, 1  ;;  %v305_v45 = vpop.f32.mrb[3].mxu1  ;;  %v254_v55 = vpop.f32.mrb[3].mxu0 }
  0xf1   :  { %v326_v50 = vrot.slane %v305_v45, 1 }
  0xf2   :  { %v324_v53 = vsel %vm321_vm1, %v322_v43, %v323_v44 }
  0xf3   :  { %v330_v56 = vadd.f32 %v324_v53, %v248_v42  ;;  %v327_v57 = vsel %vm321_vm1, %v325_v49, %v326_v50 }
  0xf4   :  { %v331_v59 = vadd.f32 %v327_v57, %v250_v48 }
  0xf5   :  { %v343_v60 = vadd.f32 %v336_v51, %v330_v56  ;;  %v309_v61 = vpop.f32.mrb[4].mxu1 }
  0xf6   :  { %v344_v62 = vadd.f32 %v340_v54, %v331_v59  ;;  %v349_v63 = vrot.slane %v309_v61, 1  ;;  %v311_v0 = vpop.f32.mrb[5].mxu1  ;;  %v258_v4 = vpop.f32.mrb[4].mxu0 }
  0xf7   :  { %v345_v1 = vmax.f32 %v343_v60, 0.0  ;;  %v351_v3 = vrot.slane %v311_v0, 1  ;;  %v313_v6 = vpop.f32.mrb[6].mxu1  ;;  %v260_v11 = vpop.f32.mrb[5].mxu0 }
  0xf8   :  { %v346_v8 = vmax.f32 %v344_v62, 0.0  ;;  %v350_v9 = vsel %vm321_vm1, %v323_v44, %v349_v63  ;;  %v359_v10 = vadd.f32 %v349_v63, %v258_v4  ;;  %v314_v12 = vpop.f32.mrb[7].mxu1  ;;  %v262_v17 = vpop.f32.mrb[6].mxu0 }
  0xf9   :  { %v394_v13 = vrot.slane %v345_v1, 1  ;;  %v357_v14 = vadd.f32 %v350_v9, %v252_v52  ;;  %v352_v15 = vsel %vm321_vm1, %v326_v50, %v351_v3  ;;  %v360_v16 = vadd.f32 %v351_v3, %v260_v11  ;;  %v263_v22 = vpop.f32.mrb[7].mxu0  ;;  %v4012_v11 = vld [vmem:[%s5716_s3 + $0x200] ss:$16 sps:$4 sm:$0xff]   ;;  %v4015_v12 = vld [vmem:[%s5716_s3 + $0x208] ss:$16 sps:$4 sm:$0xff]  }
  0xfa   :  { %v371_v18 = vcombine.low %v345_v1, %v346_v8  ;;  %v395_v19 = vrot.slane %v346_v8, 1  ;;  %v423_v20 = vcombine.high %v345_v1, %v346_v8  ;;  %v358_v21 = vadd.f32 %v352_v15, %v254_v55  ;;  %v4023_v22 = vld [vmem:[%s5716_s3 + $0x22c] ss:$16 sps:$4 sm:$0xff]  }
  0xfb   :  { %v361_v24 = vadd.f32 %v357_v14, %v336_v51  ;;  %v363_v25 = vadd.f32 %v359_v10, %v336_v51  ;;  %v364_v26 = vadd.f32 %v360_v16, %v340_v54 }
  0xfc   :  { %v378_v27 = vrot.slane %v371_v18, %v4803_v7  ;;  %v396_v28 = vcombine.low %v394_v13, %v395_v19  ;;  %v424_v29 = vcombine.high %v394_v13, %v395_v19  ;;  %v431_v30 = vrot.slane %v423_v20, %v4803_v7 }
  0xfd   :  { %v365_v31 = vmax.f32 %v361_v24, 0.0  ;;  %v362_v32 = vadd.f32 %v358_v21, %v340_v54  ;;  %v367_v33 = vmax.f32 %v363_v25, 0.0  ;;  %v368_v36 = vmax.f32 %v364_v26, 0.0  ;;  %v4020_v21 = vld [vmem:[%s5716_s3 + $0x224] ss:$16 sps:$4 sm:$0xff]  }
  0xfe   :  { %v385_v38 = vrot.slane %v378_v27, %v4803_v7  ;;  %v403_v39 = vrot.slane %v396_v28, %v4803_v7  ;;  %v438_v41 = vrot.slane %v424_v29, %v4803_v7  ;;  %v451_v42 = vcombine.high %v431_v30, %v431_v30  ;;  %v4018_v25 = vld [vmem:[%s5716_s3 + $0x220] ss:$16 sps:$4 sm:$0xff]   ;;  %v4021_v26 = vld [vmem:[%s5716_s3 + $0x228] ss:$16 sps:$4 sm:$0xff]   ;;  %v4029_v28 = vld [vmem:[%s5716_s3 + $0x24c] ss:$16 sps:$4 sm:$0xff]  }
  0xff   :  { %v486_v43 = vrot.slane %v365_v31, 1  ;;  %v366_v44 = vmax.f32 %v362_v32, 0.0  ;;  %v544_v45 = vcombine.low %v367_v33, %v368_v36  ;;  %v4024_v29 = vld [vmem:[%s5716_s3 + $0x240] ss:$16 sps:$4 sm:$0xff]   ;;  %v4035_v32 = vld [vmem:[%s5716_s3 + $0x26c] ss:$16 sps:$4 sm:$0xff]  }
 0x100   :  { %392 = vst.msk [vmem:[#allocation2 + $0x10] ss:$8 sm:$0x3] %vm4808_vm2, %v385_v38  ;;  %v404_v47 = vcombine.high %v378_v27, %v403_v39  ;;  %v439_v48 = vcombine.high %v431_v30, %v438_v41  ;;  %v458_v49 = vrot.slane %v451_v42, %v4803_v7  ;;  %v4026_v27 = vld [vmem:[%s5716_s3 + $0x244] ss:$16 sps:$4 sm:$0xff]  }
 0x101   :  { %v466_v50 = vcombine.low %v365_v31, %v366_v44  ;;  %v487_v51 = vrot.slane %v366_v44, 1  ;;  %v509_v52 = vcombine.high %v365_v31, %v366_v44  ;;  %v551_v53 = vrot.slane %v544_v45, %v4803_v7  ;;  %v4027_v30 = vld [vmem:[%s5716_s3 + $0x248] ss:$16 sps:$4 sm:$0xff]   ;;  %v4032_v31 = vld [vmem:[%s5716_s3 + $0x264] ss:$16 sps:$4 sm:$0xff]  }
 0x102   :  { %v411_v54 = vrot.slane %v404_v47, %v4803_v7  ;;  %v446_v55 = vrot.slane %v439_v48, %v4803_v7  ;;  %v459_v34 = vcombine.high %v458_v49, %v458_v49  ;;  %v4030_v33 = vld [vmem:[%s5716_s3 + $0x260] ss:$16 sps:$4 sm:$0xff]   ;;  %v4033_v36 = vld [vmem:[%s5716_s3 + $0x268] ss:$16 sps:$4 sm:$0xff]   ;;  %v4038_v38 = vld [vmem:[%s5716_s3 + $0x284] ss:$16 sps:$4 sm:$0xff]  }
 0x103   :  { %v473_v56 = vrot.slane %v466_v50, %v4803_v7  ;;  %v488_v57 = vcombine.low %v486_v43, %v487_v51  ;;  %v510_v58 = vcombine.high %v486_v43, %v487_v51  ;;  %v558_v60 = vrot.slane %v551_v53, %v4803_v7  ;;  %v4041_v39 = vld [vmem:[%s5716_s3 + $0x28c] ss:$16 sps:$4 sm:$0xff]   ;;  %v4036_v41 = vld [vmem:[%s5716_s3 + $0x280] ss:$16 sps:$4 sm:$0xff]   ;;  %v4039_v42 = vld [vmem:[%s5716_s3 + $0x288] ss:$16 sps:$4 sm:$0xff]  }
 0x104   :  { %416 = vst.msk [vmem:[#allocation2 + $0x1] ss:$8 sm:$0xf] %vm4818_vm3, %v411_v54  ;;  %v418_v59 = vcombine.high %v411_v54, %v411_v54  ;;  %449 = vst.msk [vmem:[#allocation2 + $0x3] ss:$8 sm:$0xf] %vm4818_vm3, %v446_v55  ;;  %v517_v63 = vrot.slane %v509_v52, %v4803_v7 }
 0x105   :  { %462 = vst.msk [vmem:[#allocation2 + $0x4] ss:$8 sm:$0x3] %vm4808_vm2, %v459_v34  ;;  %v474_v61 = vcombine.high %v473_v56, %v473_v56  ;;  %v495_v62 = vrot.slane %v488_v57, %v4803_v7  ;;  %v524_v0 = vrot.slane %v510_v58, %v4803_v7  ;;  %561 = vst.msk [vmem:[#allocation2 + $0x21] ss:$8 sm:$0x3] %vm4808_vm2, %v558_v60 }
 0x106   :  { %421 = vst.msk [vmem:[#allocation2 + $0x2] ss:$8 sm:$0xf] %vm4818_vm3, %v418_v59  ;;  %v4044_v43 = vld [vmem:[%s5716_s3 + $0x2a4] ss:$16 sps:$4 sm:$0xff]  }
 0x107   :  { %v481_v1 = vrot.slane %v474_v61, %v4803_v7  ;;  %v496_v3 = vcombine.low %v473_v56, %v495_v62  ;;  %v525_v4 = vcombine.low %v517_v63, %v524_v0  ;;  %v4047_v44 = vld [vmem:[%s5716_s3 + $0x2ac] ss:$16 sps:$4 sm:$0xff]   ;;  %v4042_v45 = vld [vmem:[%s5716_s3 + $0x2a0] ss:$16 sps:$4 sm:$0xff]   ;;  %v4045_v47 = vld [vmem:[%s5716_s3 + $0x2a8] ss:$16 sps:$4 sm:$0xff]  }
 0x108   :  { %v4050_v48 = vld [vmem:[%s5716_s3 + $0x2c4] ss:$16 sps:$4 sm:$0xff]   ;;  %v4053_v49 = vld [vmem:[%s5716_s3 + $0x2cc] ss:$16 sps:$4 sm:$0xff]   ;;  %v4048_v50 = vld [vmem:[%s5716_s3 + $0x2c0] ss:$16 sps:$4 sm:$0xff]  }
 0x109   :  { %484 = vst.msk [vmem:[#allocation2 + $0x15] ss:$8 sm:$0x3] %vm4808_vm2, %v481_v1  ;;  %v503_v6 = vrot.slane %v496_v3, %v4803_v7  ;;  %v532_v8 = vrot.slane %v525_v4, %v4803_v7  ;;  %v4051_v51 = vld [vmem:[%s5716_s3 + $0x2c8] ss:$16 sps:$4 sm:$0xff]  }
 0x10a   :  { %v4056_v52 = vld [vmem:[%s5716_s3 + $0x2e4] ss:$16 sps:$4 sm:$0xff]   ;;  %v4059_v53 = vld [vmem:[%s5716_s3 + $0x2ec] ss:$16 sps:$4 sm:$0xff]   ;;  %v4054_v54 = vld [vmem:[%s5716_s3 + $0x2e0] ss:$16 sps:$4 sm:$0xff]  }
 0x10b   :  { %v504_v9 = vcombine.high %v503_v6, %v503_v6  ;;  %v537_v10 = vcombine.high %v532_v8, %v532_v8  ;;  %535 = vst.msk [vmem:[#allocation2 + $0x7] ss:$8 sm:$0xf] %vm4818_vm3, %v532_v8  ;;  %v4057_v55 = vld [vmem:[%s5716_s3 + $0x2e8] ss:$16 sps:$4 sm:$0xff]  }
 0x10c   :  { %v4062_v34 = vld [vmem:[%s5716_s3 + $0x304] ss:$16 sps:$4 sm:$0xff]   ;;  %v4065_v56 = vld [vmem:[%s5716_s3 + $0x30c] ss:$16 sps:$4 sm:$0xff]   ;;  %v4060_v57 = vld [vmem:[%s5716_s3 + $0x300] ss:$16 sps:$4 sm:$0xff]  }
 0x10d   :  { %507 = vst.msk [vmem:[#allocation2 + $0x6] ss:$8 sm:$0xf] %vm4818_vm3, %v504_v9  ;;  %540 = vst.msk [vmem:[#allocation2 + $0x20] ss:$8 sm:$0xf] %vm4818_vm3, %v537_v10 }
 0x10e   :  { %v4063_v58 = vld [vmem:[%s5716_s3 + $0x308] ss:$16 sps:$4 sm:$0xff]   ;;  %v4068_v59 = vld [vmem:[%s5716_s3 + $0x324] ss:$16 sps:$4 sm:$0xff]   ;;  %v4071_v60 = vld [vmem:[%s5716_s3 + $0x32c] ss:$16 sps:$4 sm:$0xff]  }
 0x10f   :  { %v4066_v61 = vld [vmem:[%s5716_s3 + $0x320] ss:$16 sps:$4 sm:$0xff]   ;;  %v4069_v62 = vld [vmem:[%s5716_s3 + $0x328] ss:$16 sps:$4 sm:$0xff]   ;;  %v4074_v63 = vld [vmem:[%s5716_s3 + $0x344] ss:$16 sps:$4 sm:$0xff]  }
 0x110   :  { %v4077_v0 = vld [vmem:[%s5716_s3 + $0x34c] ss:$16 sps:$4 sm:$0xff]   ;;  %v4072_v1 = vld [vmem:[%s5716_s3 + $0x340] ss:$16 sps:$4 sm:$0xff]   ;;  %v4075_v3 = vld [vmem:[%s5716_s3 + $0x348] ss:$16 sps:$4 sm:$0xff]  }
 0x111   :  { %v4080_v4 = vld [vmem:[%s5716_s3 + $0x364] ss:$16 sps:$4 sm:$0xff]   ;;  %v4083_v6 = vld [vmem:[%s5716_s3 + $0x36c] ss:$16 sps:$4 sm:$0xff]   ;;  %v4078_v8 = vld [vmem:[%s5716_s3 + $0x360] ss:$16 sps:$4 sm:$0xff]  }
 0x112   :  { %v4081_v9 = vld [vmem:[%s5716_s3 + $0x368] ss:$16 sps:$4 sm:$0xff]   ;;  %v4086_v10 = vld [vmem:[%s5716_s3 + $0x384] ss:$16 sps:$4 sm:$0xff]  }
 0x114   :  { %v564_v13 = vld [vmem:[#allocation2 + $0x8] sm:$0xff]  ;;  %v563_v15 = vld [vmem:[#allocation2] sm:$0xff]  ;;  %v566_v18 = vld [vmem:[#allocation2 + $0x18] sm:$0xff] }
 0x115   :  { %v568_v14 = vld [vmem:[#allocation2 + $0x28] sm:$0x3]  ;;  %v567_v17 = vld [vmem:[#allocation2 + $0x20] sm:$0x3]  ;;  %v570_v19 = vld [vmem:[#allocation2 + $0x38] sm:$0x3] }
 0x116   :  { %v572_v16 = vpack.c.bf16 %v568_v14, %v564_v13  ;;  %v571_v20 = vpack.c.bf16 %v567_v17, %v563_v15  ;;  %v574_v24 = vpack.c.bf16 %v570_v19, %v566_v18  ;;  %v4087_v13 = vld [vmem:[%s5716_s3 + $0x388] ss:$16 sps:$4 sm:$0xff]   ;;  %v4092_v14 = vld [vmem:[%s5716_s3 + $0x3a4] ss:$16 sps:$4 sm:$0xff]   ;;  %v4095_v15 = vld [vmem:[%s5716_s3 + $0x3ac] ss:$16 sps:$4 sm:$0xff]  }
 0x117   :  { %v4093_v17 = vld [vmem:[%s5716_s3 + $0x3a8] ss:$16 sps:$4 sm:$0xff]   ;;  %v4098_v18 = vld [vmem:[%s5716_s3 + $0x3c4] ss:$16 sps:$4 sm:$0xff]   ;;  %v4101_v19 = vld [vmem:[%s5716_s3 + $0x3cc] ss:$16 sps:$4 sm:$0xff]  }
 0x118   :  { %1375 = vmatprep.mubr.bf16.mxu0 %v572_v16  ;;  %1461 = vmatprep.mubr.bf16.mxu1 %v572_v16  ;;  %v4090_v16 = vld [vmem:[%s5716_s3 + $0x3a0] ss:$16 sps:$4 sm:$0xff]  }
 0x119   :  { %1376 = vmatmul.mubr.bf16.vlgmr.msra.gmra.mrb[8].mxu0 %v571_v20  ;;  %1462 = vmatmul.mubr.bf16.vlgmr.msra.gmra.mrb[8].mxu1 %v571_v20  ;;  %v4096_v20 = vld [vmem:[%s5716_s3 + $0x3c0] ss:$16 sps:$4 sm:$0xff]  }
 0x11a   :  { %1387 = vmatpush1.bf16.msra.mxu0 %v4012_v11  ;;  %1473 = vmatpush1.bf16.msra.mxu1 %v4015_v12  ;;  %v4089_v11 = vld [vmem:[%s5716_s3 + $0x38c] ss:$16 sps:$4 sm:$0xff]   ;;  %v4084_v12 = vld [vmem:[%s5716_s3 + $0x380] ss:$16 sps:$4 sm:$0xff]  }
 0x11b   :  { %1418 = vmatprep.mubr.bf16.mxu0 %v574_v24  ;;  %1504 = vmatprep.mubr.bf16.mxu1 %v574_v24  ;;  %v4107_v24 = vld [vmem:[%s5716_s3 + $0x3ec] ss:$16 sps:$4 sm:$0xff]  }
 0x11c   :  { %1388 = vmatprep.subr.bf16.mxu0 %v4020_v21  ;;  %1474 = vmatprep.subr.bf16.mxu1 %v4023_v22  ;;  %v4099_v21 = vld [vmem:[%s5716_s3 + $0x3c8] ss:$16 sps:$4 sm:$0xff]   ;;  %v4104_v22 = vld [vmem:[%s5716_s3 + $0x3e4] ss:$16 sps:$4 sm:$0xff]  }
 0x11e   :  { %1389 = vmatpush1.bf16.msra.mxu0 %v4018_v25  ;;  %1475 = vmatpush1.bf16.msra.mxu1 %v4021_v26  ;;  %v4102_v25 = vld [vmem:[%s5716_s3 + $0x3e0] ss:$16 sps:$4 sm:$0xff]   ;;  %v4105_v26 = vld [vmem:[%s5716_s3 + $0x3e8] ss:$16 sps:$4 sm:$0xff]  }
 0x11f   :  { %1390 = vmatprep.subr.bf16.mxu0 %v4026_v27  ;;  %1476 = vmatprep.subr.bf16.mxu1 %v4029_v28  ;;  %v4110_v27 = vld [vmem:[%s5718_s5 + $0x4] ss:$16 sps:$4 sm:$0xff]  }
 0x120   :  { %v4113_v28 = vld [vmem:[%s5718_s5 + $0x204] ss:$16 sps:$4 sm:$0xff]  }
 0x122   :  { %1391 = vmatpush1.bf16.msra.mxu0 %v4024_v29  ;;  %1477 = vmatpush1.bf16.msra.mxu1 %v4027_v30  ;;  %v565_v29 = vld [vmem:[#allocation2 + $0x10] sm:$0xff] }
 0x123   :  { %1392 = vmatprep.subr.bf16.mxu0 %v4032_v31  ;;  %1478 = vmatprep.subr.bf16.mxu1 %v4035_v32  ;;  %v569_v30 = vld [vmem:[#allocation2 + $0x30] sm:$0x3] }
 0x124   :  { %v4108_v31 = vld [vmem:[%s5718_s5] ss:$16 sps:$4 sm:$0xff]  }
 0x125   :  { %v4111_v32 = vld [vmem:[%s5718_s5 + $0x200] ss:$16 sps:$4 sm:$0xff]  }
 0x126   :  { %1393 = vmatpush1.bf16.msra.mxu0 %v4030_v33  ;;  %1479 = vmatpush1.bf16.msra.mxu1 %v4033_v36  ;;  %v573_v33 = vpack.c.bf16 %v569_v30, %v565_v29  ;;  %v4116_v36 = vld [vmem:[%s5718_s5 + $0x24] ss:$16 sps:$4 sm:$0xff]   ;;  %v4189_v29 = vld [vmem:[%s5718_s5 + $0x3a0] ss:$16 sps:$4 sm:$0xff]  }
 0x127   :  { %1394 = vmatprep.subr.bf16.mxu0 %v4038_v38  ;;  %1480 = vmatprep.subr.bf16.mxu1 %v4041_v39  ;;  %v4119_v38 = vld [vmem:[%s5718_s5 + $0x224] ss:$16 sps:$4 sm:$0xff]   ;;  %v4114_v39 = vld [vmem:[%s5718_s5 + $0x20] ss:$16 sps:$4 sm:$0xff]  }
 0x128   :  { %v4192_v30 = vld [vmem:[%s5718_s5 + $0x1c0] ss:$16 sps:$4 sm:$0xff]  }
 0x12a   :  { %1395 = vmatpush1.bf16.msra.mxu0 %v4036_v41  ;;  %1481 = vmatpush1.bf16.msra.mxu1 %v4039_v42  ;;  %v4117_v41 = vld [vmem:[%s5718_s5 + $0x220] ss:$16 sps:$4 sm:$0xff]   ;;  %v4122_v42 = vld [vmem:[%s5718_s5 + $0x44] ss:$16 sps:$4 sm:$0xff]  }
 0x12b   :  { %1396 = vmatprep.subr.bf16.mxu0 %v4044_v43  ;;  %1482 = vmatprep.subr.bf16.mxu1 %v4047_v44  ;;  %v4125_v43 = vld [vmem:[%s5718_s5 + $0x244] ss:$16 sps:$4 sm:$0xff]   ;;  %v4120_v44 = vld [vmem:[%s5718_s5 + $0x40] ss:$16 sps:$4 sm:$0xff]  }
 0x12e   :  { %1397 = vmatpush1.bf16.msra.mxu0 %v4042_v45  ;;  %1483 = vmatpush1.bf16.msra.mxu1 %v4045_v47  ;;  %v4123_v45 = vld [vmem:[%s5718_s5 + $0x240] ss:$16 sps:$4 sm:$0xff]   ;;  %v4128_v47 = vld [vmem:[%s5718_s5 + $0x64] ss:$16 sps:$4 sm:$0xff]  }
 0x12f   :  { %1398 = vmatprep.subr.bf16.mxu0 %v4050_v48  ;;  %1484 = vmatprep.subr.bf16.mxu1 %v4053_v49  ;;  %v4131_v48 = vld [vmem:[%s5718_s5 + $0x264] ss:$16 sps:$4 sm:$0xff]   ;;  %v4126_v49 = vld [vmem:[%s5718_s5 + $0x60] ss:$16 sps:$4 sm:$0xff]  }
 0x132   :  { %1399 = vmatpush1.bf16.msra.mxu0 %v4048_v50  ;;  %1485 = vmatpush1.bf16.msra.mxu1 %v4051_v51  ;;  %v4129_v50 = vld [vmem:[%s5718_s5 + $0x260] ss:$16 sps:$4 sm:$0xff]   ;;  %v4134_v51 = vld [vmem:[%s5718_s5 + $0x84] ss:$16 sps:$4 sm:$0xff]  }
 0x133   :  { %1400 = vmatprep.subr.bf16.mxu0 %v4056_v52  ;;  %1486 = vmatprep.subr.bf16.mxu1 %v4059_v53  ;;  %v4137_v52 = vld [vmem:[%s5718_s5 + $0x284] ss:$16 sps:$4 sm:$0xff]   ;;  %v4132_v53 = vld [vmem:[%s5718_s5 + $0x80] ss:$16 sps:$4 sm:$0xff]  }
 0x136   :  { %1401 = vmatpush1.bf16.msra.mxu0 %v4054_v54  ;;  %1487 = vmatpush1.bf16.msra.mxu1 %v4057_v55  ;;  %v4135_v54 = vld [vmem:[%s5718_s5 + $0x280] ss:$16 sps:$4 sm:$0xff]   ;;  %v4140_v55 = vld [vmem:[%s5718_s5 + $0xa4] ss:$16 sps:$4 sm:$0xff]  }
 0x137   :  { %1402 = vmatprep.subr.bf16.mxu0 %v4062_v34  ;;  %1488 = vmatprep.subr.bf16.mxu1 %v4065_v56  ;;  %v4143_v34 = vld [vmem:[%s5718_s5 + $0x2a4] ss:$16 sps:$4 sm:$0xff]   ;;  %v4138_v56 = vld [vmem:[%s5718_s5 + $0xa0] ss:$16 sps:$4 sm:$0xff]  }
 0x13a   :  { %1403 = vmatpush1.bf16.msra.mxu0 %v4060_v57  ;;  %1489 = vmatpush1.bf16.msra.mxu1 %v4063_v58  ;;  %v4141_v57 = vld [vmem:[%s5718_s5 + $0x2a0] ss:$16 sps:$4 sm:$0xff]   ;;  %v4146_v58 = vld [vmem:[%s5718_s5 + $0xc4] ss:$16 sps:$4 sm:$0xff]  }
 0x13b   :  { %1404 = vmatprep.subr.bf16.mxu0 %v4068_v59  ;;  %1490 = vmatprep.subr.bf16.mxu1 %v4071_v60  ;;  %v4149_v59 = vld [vmem:[%s5718_s5 + $0x2c4] ss:$16 sps:$4 sm:$0xff]   ;;  %v4144_v60 = vld [vmem:[%s5718_s5 + $0xc0] ss:$16 sps:$4 sm:$0xff]  }
 0x13e   :  { %1405 = vmatpush1.bf16.msra.mxu0 %v4066_v61  ;;  %1491 = vmatpush1.bf16.msra.mxu1 %v4069_v62  ;;  %v4147_v61 = vld [vmem:[%s5718_s5 + $0x2c0] ss:$16 sps:$4 sm:$0xff]   ;;  %v4152_v62 = vld [vmem:[%s5718_s5 + $0xe4] ss:$16 sps:$4 sm:$0xff]  }
 0x13f   :  { %1406 = vmatprep.subr.bf16.mxu0 %v4074_v63  ;;  %1492 = vmatprep.subr.bf16.mxu1 %v4077_v0  ;;  %v4150_v63 = vld [vmem:[%s5718_s5 + $0xe0] ss:$16 sps:$4 sm:$0xff]   ;;  %v4155_v0 = vld [vmem:[%s5718_s5 + $0x2e4] ss:$16 sps:$4 sm:$0xff]  }
 0x142   :  { %1407 = vmatpush1.bf16.msra.mxu0 %v4072_v1  ;;  %1493 = vmatpush1.bf16.msra.mxu1 %v4075_v3  ;;  %v4153_v1 = vld [vmem:[%s5718_s5 + $0x2e0] ss:$16 sps:$4 sm:$0xff]   ;;  %v4158_v3 = vld [vmem:[%s5718_s5 + $0x104] ss:$16 sps:$4 sm:$0xff]  }
 0x143   :  { %1408 = vmatprep.subr.bf16.mxu0 %v4080_v4  ;;  %1494 = vmatprep.subr.bf16.mxu1 %v4083_v6  ;;  %v4156_v4 = vld [vmem:[%s5718_s5 + $0x100] ss:$16 sps:$4 sm:$0xff]   ;;  %v4161_v6 = vld [vmem:[%s5718_s5 + $0x304] ss:$16 sps:$4 sm:$0xff]  }
 0x146   :  { %1409 = vmatpush1.bf16.msra.mxu0 %v4078_v8  ;;  %1495 = vmatpush1.bf16.msra.mxu1 %v4081_v9  ;;  %v4159_v8 = vld [vmem:[%s5718_s5 + $0x300] ss:$16 sps:$4 sm:$0xff]   ;;  %v4164_v9 = vld [vmem:[%s5718_s5 + $0x124] ss:$16 sps:$4 sm:$0xff]  }
 0x147   :  { %1410 = vmatprep.subr.bf16.mxu0 %v4086_v10  ;;  %1496 = vmatprep.subr.bf16.mxu1 %v4089_v11  ;;  %v4162_v10 = vld [vmem:[%s5718_s5 + $0x120] ss:$16 sps:$4 sm:$0xff]   ;;  %v4167_v11 = vld [vmem:[%s5718_s5 + $0x324] ss:$16 sps:$4 sm:$0xff]  }
 0x14a   :  { %1411 = vmatpush1.bf16.msra.mxu0 %v4084_v12  ;;  %1497 = vmatpush1.bf16.msra.mxu1 %v4087_v13  ;;  %v4165_v12 = vld [vmem:[%s5718_s5 + $0x320] ss:$16 sps:$4 sm:$0xff]   ;;  %v4170_v13 = vld [vmem:[%s5718_s5 + $0x144] ss:$16 sps:$4 sm:$0xff]  }
 0x14b   :  { %1412 = vmatprep.subr.bf16.mxu0 %v4092_v14  ;;  %1498 = vmatprep.subr.bf16.mxu1 %v4095_v15  ;;  %v4168_v14 = vld [vmem:[%s5718_s5 + $0x140] ss:$16 sps:$4 sm:$0xff]   ;;  %v4173_v15 = vld [vmem:[%s5718_s5 + $0x344] ss:$16 sps:$4 sm:$0xff]  }
 0x14e   :  { %1413 = vmatpush1.bf16.msra.mxu0 %v4090_v16  ;;  %1499 = vmatpush1.bf16.msra.mxu1 %v4093_v17  ;;  %v4171_v16 = vld [vmem:[%s5718_s5 + $0x340] ss:$16 sps:$4 sm:$0xff]   ;;  %v4176_v17 = vld [vmem:[%s5718_s5 + $0x164] ss:$16 sps:$4 sm:$0xff]  }
 0x14f   :  { %1414 = vmatprep.subr.bf16.mxu0 %v4098_v18  ;;  %1500 = vmatprep.subr.bf16.mxu1 %v4101_v19  ;;  %v4174_v18 = vld [vmem:[%s5718_s5 + $0x160] ss:$16 sps:$4 sm:$0xff]   ;;  %v4179_v19 = vld [vmem:[%s5718_s5 + $0x364] ss:$16 sps:$4 sm:$0xff]  }
 0x152   :  { %1415 = vmatpush1.bf16.msra.mxu0 %v4096_v20  ;;  %1501 = vmatpush1.bf16.msra.mxu1 %v4099_v21  ;;  %v4177_v20 = vld [vmem:[%s5718_s5 + $0x360] ss:$16 sps:$4 sm:$0xff]   ;;  %v4182_v21 = vld [vmem:[%s5718_s5 + $0x184] ss:$16 sps:$4 sm:$0xff]  }
 0x153   :  { %1416 = vmatprep.subr.bf16.mxu0 %v4104_v22  ;;  %1502 = vmatprep.subr.bf16.mxu1 %v4107_v24  ;;  %v4180_v22 = vld [vmem:[%s5718_s5 + $0x180] ss:$16 sps:$4 sm:$0xff]   ;;  %v4185_v24 = vld [vmem:[%s5718_s5 + $0x384] ss:$16 sps:$4 sm:$0xff]  }
 0x156   :  { %1417 = vmatpush1.bf16.msra.mxu0 %v4102_v25  ;;  %1503 = vmatpush1.bf16.msra.mxu1 %v4105_v26  ;;  %v4183_v25 = vld [vmem:[%s5718_s5 + $0x380] ss:$16 sps:$4 sm:$0xff]   ;;  %v4188_v26 = vld [vmem:[%s5718_s5 + $0x1a4] ss:$16 sps:$4 sm:$0xff]  }
 0x157   :  { %2459 = vmatprep.subr.bf16.mxu0 %v4110_v27  ;;  %2500 = vmatprep.subr.bf16.mxu1 %v4113_v28  ;;  %v4186_v27 = vld [vmem:[%s5718_s5 + $0x1a0] ss:$16 sps:$4 sm:$0xff]   ;;  %v4191_v28 = vld [vmem:[%s5718_s5 + $0x3a4] ss:$16 sps:$4 sm:$0xff]  }
 0x159   :  { %1419 = vmatmul.mubr.bf16.vlgmr.msra.gmra.mrb[8].mxu0 %v573_v33  ;;  %1505 = vmatmul.mubr.bf16.vlgmr.msra.gmra.mrb[8].mxu1 %v573_v33  ;;  %v4197_v33 = vld [vmem:[%s5718_s5 + $0x3c4] ss:$16 sps:$4 sm:$0xff]  }
 0x15a   :  { %2460 = vmatpush1.bf16.msra.mxu0 %v4108_v31  ;;  %2501 = vmatpush1.bf16.msra.mxu1 %v4111_v32  ;;  %v4194_v31 = vld [vmem:[%s5718_s5 + $0x1c4] ss:$16 sps:$4 sm:$0xff]   ;;  %v4195_v32 = vld [vmem:[%s5718_s5 + $0x3c0] ss:$16 sps:$4 sm:$0xff]  }
 0x15b   :  { %2461 = vmatprep.subr.bf16.mxu0 %v4116_v36  ;;  %2502 = vmatprep.subr.bf16.mxu1 %v4119_v38  ;;  %v4200_v36 = vld [vmem:[%s5718_s5 + $0x1e4] ss:$16 sps:$4 sm:$0xff]  }
 0x15c   :  { %v4203_v38 = vld [vmem:[%s5718_s5 + $0x3e4] ss:$16 sps:$4 sm:$0xff]  }
 0x15e   :  { %2462 = vmatpush1.bf16.msra.mxu0 %v4114_v39  ;;  %2503 = vmatpush1.bf16.msra.mxu1 %v4117_v41  ;;  %v4198_v39 = vld [vmem:[%s5718_s5 + $0x1e0] ss:$16 sps:$4 sm:$0xff]  }
 0x15f   :  { %2463 = vmatprep.subr.bf16.mxu0 %v4122_v42  ;;  %2504 = vmatprep.subr.bf16.mxu1 %v4125_v43  ;;  %v4201_v41 = vld [vmem:[%s5718_s5 + $0x3e0] ss:$16 sps:$4 sm:$0xff]   ;;  %v4206_v42 = vld [vmem:[%s5718_s5 + $0xc] ss:$16 sps:$4 sm:$0xff]  }
 0x160   :  { %v1515_v43 = vld [vmem:[%s5717_s4] sm:$0x3] }
 0x162   :  { %2464 = vmatpush1.bf16.msra.mxu0 %v4120_v44  ;;  %2505 = vmatpush1.bf16.msra.mxu1 %v4123_v45 }
 0x163   :  { %2465 = vmatprep.subr.bf16.mxu0 %v4128_v47  ;;  %2506 = vmatprep.subr.bf16.mxu1 %v4131_v48  ;;  %v1528_v48 = vrot.slane %v1515_v43, %v4790_v37 }
 0x166   :  { %2466 = vmatpush1.bf16.msra.mxu0 %v4126_v49  ;;  %2507 = vmatpush1.bf16.msra.mxu1 %v4129_v50 }
 0x167   :  { %2467 = vmatprep.subr.bf16.mxu0 %v4134_v51  ;;  %2508 = vmatprep.subr.bf16.mxu1 %v4137_v52  ;;  %v1532_v52 = vrot.slane %v1515_v43, %v4796_v40 }
 0x16a   :  { %2468 = vmatpush1.bf16.msra.mxu0 %v4132_v53  ;;  %2509 = vmatpush1.bf16.msra.mxu1 %v4135_v54 }
 0x16b   :  { %2469 = vmatprep.subr.bf16.mxu0 %v4140_v55  ;;  %2510 = vmatprep.subr.bf16.mxu1 %v4143_v34 }
 0x16e   :  { %2470 = vmatpush1.bf16.msra.mxu0 %v4138_v56  ;;  %2511 = vmatpush1.bf16.msra.mxu1 %v4141_v57 }
 0x16f   :  { %2471 = vmatprep.subr.bf16.mxu0 %v4146_v58  ;;  %2512 = vmatprep.subr.bf16.mxu1 %v4149_v59 }
 0x172   :  { %2472 = vmatpush1.bf16.msra.mxu0 %v4144_v60  ;;  %2513 = vmatpush1.bf16.msra.mxu1 %v4147_v61 }
 0x173   :  { %2473 = vmatprep.subr.bf16.mxu0 %v4152_v62  ;;  %2514 = vmatprep.subr.bf16.mxu1 %v4155_v0 }
 0x176   :  { %2474 = vmatpush1.bf16.msra.mxu0 %v4150_v63  ;;  %2515 = vmatpush1.bf16.msra.mxu1 %v4153_v1 }
 0x177   :  { %2475 = vmatprep.subr.bf16.mxu0 %v4158_v3  ;;  %2516 = vmatprep.subr.bf16.mxu1 %v4161_v6 }
 0x17a   :  { %2476 = vmatpush1.bf16.msra.mxu0 %v4156_v4  ;;  %2517 = vmatpush1.bf16.msra.mxu1 %v4159_v8 }
 0x17b   :  { %2477 = vmatprep.subr.bf16.mxu0 %v4164_v9  ;;  %2518 = vmatprep.subr.bf16.mxu1 %v4167_v11 }
 0x17e   :  { %2478 = vmatpush1.bf16.msra.mxu0 %v4162_v10  ;;  %2519 = vmatpush1.bf16.msra.mxu1 %v4165_v12 }
 0x17f   :  { %2479 = vmatprep.subr.bf16.mxu0 %v4170_v13  ;;  %2520 = vmatprep.subr.bf16.mxu1 %v4173_v15 }
 0x182   :  { %2480 = vmatpush1.bf16.msra.mxu0 %v4168_v14  ;;  %2521 = vmatpush1.bf16.msra.mxu1 %v4171_v16 }
 0x183   :  { %2481 = vmatprep.subr.bf16.mxu0 %v4176_v17  ;;  %2522 = vmatprep.subr.bf16.mxu1 %v4179_v19 }
 0x186   :  { %2482 = vmatpush1.bf16.msra.mxu0 %v4174_v18  ;;  %2523 = vmatpush1.bf16.msra.mxu1 %v4177_v20 }
 0x187   :  { %2483 = vmatprep.subr.bf16.mxu0 %v4182_v21  ;;  %2524 = vmatprep.subr.bf16.mxu1 %v4185_v24 }
 0x18a   :  { %2484 = vmatpush1.bf16.msra.mxu0 %v4180_v22  ;;  %2525 = vmatpush1.bf16.msra.mxu1 %v4183_v25 }
 0x18b   :  { %2485 = vmatprep.subr.bf16.mxu0 %v4188_v26  ;;  %2526 = vmatprep.subr.bf16.mxu1 %v4191_v28 }
 0x18e   :  { %2486 = vmatpush1.bf16.msra.mxu0 %v4186_v27  ;;  %2527 = vmatpush1.bf16.msra.mxu1 %v4189_v29 }
 0x18f   :  { %2487 = vmatprep.subr.bf16.mxu0 %v4194_v31  ;;  %2528 = vmatprep.subr.bf16.mxu1 %v4197_v33 }
 0x192   :  { %2488 = vmatpush1.bf16.msra.mxu0 %v4192_v30  ;;  %2529 = vmatpush1.bf16.msra.mxu1 %v4195_v32 }
 0x193   :  { %2489 = vmatprep.subr.bf16.mxu0 %v4200_v36  ;;  %2530 = vmatprep.subr.bf16.mxu1 %v4203_v38 }
 0x196   :  { %2490 = vmatpush1.bf16.msra.mxu0 %v4198_v39  ;;  %2531 = vmatpush1.bf16.msra.mxu1 %v4201_v41 }
 0x197   :  { %2541 = vmatprep.subr.bf16.mxu0 %v4206_v42 }
 0x22c   :  { %v1420_v44 = vpop.f32.mrb[8].mxu0  ;;  %v1506_v45 = vpop.f32.mrb[8].mxu1 }
 0x22d   :  { %v1518_v47 = vrot.slane %v1506_v45, 1  ;;  %v1422_v49 = vpop.f32.mrb[9].mxu0  ;;  %v1508_v50 = vpop.f32.mrb[9].mxu1 }
 0x22e   :  { %v1519_v51 = vrot.slane %v1508_v50, 1  ;;  %v1424_v53 = vpop.f32.mrb[10].mxu0  ;;  %v1510_v54 = vpop.f32.mrb[10].mxu1 }
 0x22f   :  { %v1522_v55 = vadd.f32 %v1518_v47, %v1420_v44  ;;  %v1541_v34 = vrot.slane %v1510_v54, 1  ;;  %v1426_v56 = vpop.f32.mrb[11].mxu0  ;;  %v1512_v57 = vpop.f32.mrb[11].mxu1  ;;  %v4204_v54 = vld [vmem:[%s5718_s5 + $0x8] ss:$16 sps:$4 sm:$0xff]  }
 0x230   :  { %v1523_v58 = vadd.f32 %v1519_v51, %v1422_v49  ;;  %v1543_v59 = vrot.slane %v1512_v57, 1  ;;  %v4210_v57 = vld [vmem:[%s5718_s5 + $0x48] ss:$16 sps:$4 sm:$0xff]  }
 0x231   :  { %v1535_v60 = vadd.f32 %v1528_v48, %v1522_v55  ;;  %v1542_v61 = vsel %vm321_vm1, %v1518_v47, %v1541_v34  ;;  %v1551_v62 = vadd.f32 %v1541_v34, %v1424_v53 }
 0x232   :  { %v1536_v63 = vadd.f32 %v1532_v52, %v1523_v58  ;;  %v1549_v0 = vadd.f32 %v1542_v61, %v1420_v44  ;;  %v1544_v1 = vsel %vm321_vm1, %v1519_v51, %v1543_v59  ;;  %v1552_v3 = vadd.f32 %v1543_v59, %v1426_v56  ;;  %v4212_v56 = vld [vmem:[%s5718_s5 + $0x4c] ss:$16 sps:$4 sm:$0xff]   ;;  %v4213_v59 = vld [vmem:[%s5718_s5 + $0x68] ss:$16 sps:$4 sm:$0xff]  }
 0x233   :  { %v1537_v4 = vmax.f32 %v1535_v60, 0.0  ;;  %v1555_v6 = vadd.f32 %v1551_v62, %v1528_v48  ;;  %v1550_v8 = vadd.f32 %v1544_v1, %v1422_v49  ;;  %v4215_v58 = vld [vmem:[%s5718_s5 + $0x6c] ss:$16 sps:$4 sm:$0xff]   ;;  %v4216_v61 = vld [vmem:[%s5718_s5 + $0x88] ss:$16 sps:$4 sm:$0xff]  }
 0x234   :  { %v1538_v9 = vmax.f32 %v1536_v63, 0.0  ;;  %v1553_v10 = vadd.f32 %v1549_v0, %v1528_v48  ;;  %v1556_v11 = vadd.f32 %v1552_v3, %v1532_v52  ;;  %v4218_v60 = vld [vmem:[%s5718_s5 + $0x8c] ss:$16 sps:$4 sm:$0xff]   ;;  %v4219_v63 = vld [vmem:[%s5718_s5 + $0xa8] ss:$16 sps:$4 sm:$0xff]  }
 0x235   :  { %v1582_v12 = vrot.slane %v1537_v4, 1  ;;  %v1559_v13 = vmax.f32 %v1555_v6, 0.0  ;;  %v1554_v14 = vadd.f32 %v1550_v8, %v1532_v52  ;;  %v4221_v62 = vld [vmem:[%s5718_s5 + $0xac] ss:$16 sps:$4 sm:$0xff]   ;;  %v4222_v1 = vld [vmem:[%s5718_s5 + $0xc8] ss:$16 sps:$4 sm:$0xff]  }
 0x236   :  { %v1563_v15 = vcombine.low %v1537_v4, %v1538_v9  ;;  %v1583_v16 = vrot.slane %v1538_v9, 1  ;;  %v1557_v17 = vmax.f32 %v1553_v10, 0.0  ;;  %v1560_v18 = vmax.f32 %v1556_v11, 0.0  ;;  %v4224_v0 = vld [vmem:[%s5718_s5 + $0xcc] ss:$16 sps:$4 sm:$0xff]  }
 0x237   :  { %v1558_v19 = vmax.f32 %v1554_v14, 0.0  ;;  %v4227_v3 = vld [vmem:[%s5718_s5 + $0xec] ss:$16 sps:$4 sm:$0xff]   ;;  %v4225_v4 = vld [vmem:[%s5718_s5 + $0xe8] ss:$16 sps:$4 sm:$0xff]  }
 0x238   :  { %v1570_v20 = vrot.slane %v1563_v15, %v4803_v7  ;;  %v1584_v21 = vcombine.low %v1582_v12, %v1583_v16  ;;  %v1639_v22 = vrot.slane %v1557_v17, 1  ;;  %v1664_v24 = vcombine.low %v1559_v13, %v1560_v18  ;;  %v4230_v6 = vld [vmem:[%s5718_s5 + $0x10c] ss:$16 sps:$4 sm:$0xff]   ;;  %v4228_v8 = vld [vmem:[%s5718_s5 + $0x108] ss:$16 sps:$4 sm:$0xff]  }
 0x239   :  { %v1619_v25 = vcombine.high %v1557_v17, %v1558_v19  ;;  %v1640_v26 = vrot.slane %v1558_v19, 1  ;;  %v4233_v9 = vld [vmem:[%s5718_s5 + $0x12c] ss:$16 sps:$4 sm:$0xff]   ;;  %v4231_v10 = vld [vmem:[%s5718_s5 + $0x128] ss:$16 sps:$4 sm:$0xff]  }
 0x23a   :  { %v1577_v27 = vrot.slane %v1570_v20, %v4803_v7  ;;  %v1591_v28 = vrot.slane %v1584_v21, %v4803_v7  ;;  %v1604_v29 = vcombine.high %v1570_v20, %v1570_v20  ;;  %v1671_v30 = vrot.slane %v1664_v24, %v4803_v7  ;;  %v4236_v11 = vld [vmem:[%s5718_s5 + $0x14c] ss:$16 sps:$4 sm:$0xff]   ;;  %v4234_v12 = vld [vmem:[%s5718_s5 + $0x148] ss:$16 sps:$4 sm:$0xff]  }
 0x23b   :  { %v1626_v31 = vrot.slane %v1619_v25, %v4803_v7  ;;  %v1641_v32 = vcombine.high %v1639_v22, %v1640_v26  ;;  %v4239_v13 = vld [vmem:[%s5718_s5 + $0x16c] ss:$16 sps:$4 sm:$0xff]   ;;  %v4237_v14 = vld [vmem:[%s5718_s5 + $0x168] ss:$16 sps:$4 sm:$0xff]  }
 0x23c   :  { %1580 = vst.msk [vmem:[#allocation3 + $0x10] ss:$8 sm:$0x3] %vm4808_vm2, %v1577_v27  ;;  %v1592_v33 = vcombine.high %v1570_v20, %v1591_v28  ;;  %v1611_v36 = vrot.slane %v1604_v29, %v4803_v7  ;;  %v1678_v38 = vrot.slane %v1671_v30, %v4803_v7  ;;  %v4242_v15 = vld [vmem:[%s5718_s5 + $0x18c] ss:$16 sps:$4 sm:$0xff]  }
 0x23d   :  { %v1627_v39 = vcombine.high %v1626_v31, %v1626_v31  ;;  %v1648_v41 = vrot.slane %v1641_v32, %v4803_v7  ;;  %v4240_v16 = vld [vmem:[%s5718_s5 + $0x188] ss:$16 sps:$4 sm:$0xff]   ;;  %v4245_v17 = vld [vmem:[%s5718_s5 + $0x1ac] ss:$16 sps:$4 sm:$0xff]  }
 0x23e   :  { %v1599_v42 = vrot.slane %v1592_v33, %v4803_v7  ;;  %v1612_v43 = vcombine.high %v1611_v36, %v1611_v36  ;;  %1681 = vst.msk [vmem:[#allocation3 + $0x5] ss:$8 sm:$0x3] %vm4808_vm2, %v1678_v38  ;;  %v4243_v18 = vld [vmem:[%s5718_s5 + $0x1a8] ss:$16 sps:$4 sm:$0xff]  }
 0x23f   :  { %v1634_v44 = vrot.slane %v1627_v39, %v4803_v7  ;;  %v1649_v45 = vcombine.low %v1626_v31, %v1648_v41  ;;  %v4248_v19 = vld [vmem:[%s5718_s5 + $0x1cc] ss:$16 sps:$4 sm:$0xff]   ;;  %v4246_v20 = vld [vmem:[%s5718_s5 + $0x1c8] ss:$16 sps:$4 sm:$0xff]  }
 0x240   :  { %1602 = vst.msk [vmem:[#allocation3 + $0x1] ss:$8 sm:$0xf] %vm4818_vm3, %v1599_v42  ;;  %v4251_v21 = vld [vmem:[%s5718_s5 + $0x1ec] ss:$16 sps:$4 sm:$0xff]  }
 0x241   :  { %1615 = vst.msk [vmem:[#allocation3 + $0x2] ss:$8 sm:$0x3] %vm4808_vm2, %v1612_v43  ;;  %1637 = vst.msk [vmem:[#allocation3 + $0x13] ss:$8 sm:$0x3] %vm4808_vm2, %v1634_v44  ;;  %v1656_v47 = vrot.slane %v1649_v45, %v4803_v7 }
 0x242   :  { %v4209_v7 = vld [vmem:[%s5718_s5 + $0x2c] ss:$16 sps:$4 sm:$0xff]   ;;  %v4249_v22 = vld [vmem:[%s5718_s5 + $0x1e8] ss:$16 sps:$4 sm:$0xff]   ;;  %v4300_v43 = vld [vmem:[%s5720_s7] ss:$16 sps:$4 sm:$0xff]  }
 0x243   :  { %v1657_v48 = vcombine.high %v1656_v47, %v1656_v47  ;;  %v4254_v24 = vld [vmem:[%s5718_s5 + $0x20c] ss:$16 sps:$4 sm:$0xff]   ;;  %v4252_v25 = vld [vmem:[%s5718_s5 + $0x208] ss:$16 sps:$4 sm:$0xff]   ;;  %v4302_v44 = vld [vmem:[%s5720_s7 + $0x4] ss:$16 sps:$4 sm:$0xff]  }
 0x244   :  { %v4257_v26 = vld [vmem:[%s5718_s5 + $0x22c] ss:$16 sps:$4 sm:$0xff]   ;;  %v4255_v27 = vld [vmem:[%s5718_s5 + $0x228] ss:$16 sps:$4 sm:$0xff]   ;;  %2903 = vmatprep.subr.bf16.mxu1 %v4302_v44 }
 0x245   :  { %1660 = vst.msk [vmem:[#allocation3 + $0x4] ss:$8 sm:$0xf] %vm4818_vm3, %v1657_v48  ;;  %v4260_v28 = vld [vmem:[%s5718_s5 + $0x24c] ss:$16 sps:$4 sm:$0xff]  }
 0x246   :  { %v4258_v29 = vld [vmem:[%s5718_s5 + $0x248] ss:$16 sps:$4 sm:$0xff]   ;;  %v4263_v30 = vld [vmem:[%s5718_s5 + $0x26c] ss:$16 sps:$4 sm:$0xff]  }
 0x247   :  { %v4261_v31 = vld [vmem:[%s5718_s5 + $0x268] ss:$16 sps:$4 sm:$0xff]   ;;  %v4266_v32 = vld [vmem:[%s5718_s5 + $0x28c] ss:$16 sps:$4 sm:$0xff]  }
 0x248   :  { %v4264_v33 = vld [vmem:[%s5718_s5 + $0x288] ss:$16 sps:$4 sm:$0xff]   ;;  %v4269_v36 = vld [vmem:[%s5718_s5 + $0x2ac] ss:$16 sps:$4 sm:$0xff]  }
 0x249   :  { %v4267_v38 = vld [vmem:[%s5718_s5 + $0x2a8] ss:$16 sps:$4 sm:$0xff]   ;;  %v4272_v39 = vld [vmem:[%s5718_s5 + $0x2cc] ss:$16 sps:$4 sm:$0xff]  }
 0x24a   :  { %v4270_v41 = vld [vmem:[%s5718_s5 + $0x2c8] ss:$16 sps:$4 sm:$0xff]   ;;  %v4275_v42 = vld [vmem:[%s5718_s5 + $0x2ec] ss:$16 sps:$4 sm:$0xff]  }
 0x24b   :  { %v4273_v45 = vld [vmem:[%s5718_s5 + $0x2e8] ss:$16 sps:$4 sm:$0xff]   ;;  %v4278_v47 = vld [vmem:[%s5718_s5 + $0x30c] ss:$16 sps:$4 sm:$0xff]  }
 0x24c   :  { %v1684_v49 = vld [vmem:[#allocation3 + $0x8] sm:$0x3f]  ;;  %v1686_v50 = vld [vmem:[#allocation3 + $0x18] sm:$0x3f]  ;;  %v1683_v51 = vld [vmem:[#allocation3] sm:$0x3f] }
 0x24d   :  { %v1688_v52 = vpack.c.bf16 %v1684_v49, %v1684_v49  ;;  %v5265_v53 = vpack.c.bf16 %v1686_v50, %v1686_v50  ;;  %v5270_v55 = vpack.c.bf16 %v1683_v51, %v1683_v51  ;;  %v1685_v23 = vld [vmem:[#allocation3 + $0x10] sm:$0x3f]  ;;  %v4276_v48 = vld [vmem:[%s5718_s5 + $0x308] ss:$16 sps:$4 sm:$0xff]   ;;  %v4281_v49 = vld [vmem:[%s5718_s5 + $0x32c] ss:$16 sps:$4 sm:$0xff]  }
 0x24e   :  { %v5272_v34 = vpack.c.bf16 %v1685_v23, %v1685_v23  ;;  %v4279_v50 = vld [vmem:[%s5718_s5 + $0x328] ss:$16 sps:$4 sm:$0xff]   ;;  %v4284_v51 = vld [vmem:[%s5718_s5 + $0x34c] ss:$16 sps:$4 sm:$0xff]  }
 0x24f   :  { %2491 = vmatprep.mubr.bf16.mxu0 %v1688_v52  ;;  %2532 = vmatprep.mubr.bf16.mxu1 %v5265_v53  ;;  %v4288_v23 = vld [vmem:[%s5718_s5 + $0x388] ss:$16 sps:$4 sm:$0xff]  }
 0x250   :  { %2492 = vmatmul.mubr.bf16.vlgmr.msra.gmra.mrb[12].mxu0 %v5270_v55  ;;  %2533 = vmatmul.mubr.bf16.vlgmr.msra.gmra.mrb[12].mxu1 %v5272_v34 }
 0x251   :  { %2542 = vmatpush1.bf16.msra.mxu0 %v4204_v54  ;;  %2573 = vmatprep.mubr.bf16.mxu0 %v1688_v52  ;;  %v4282_v52 = vld [vmem:[%s5718_s5 + $0x348] ss:$16 sps:$4 sm:$0xff]  }
 0x252   :  { %2543 = vmatprep.subr.bf16.mxu0 %v4209_v7  ;;  %2935 = vmatprep.mubr.bf16.mxu1 %v4412_v2  ;;  %v4285_v54 = vld [vmem:[%s5718_s5 + $0x368] ss:$16 sps:$4 sm:$0xff]   ;;  %v4293_v7 = vld [vmem:[%s5718_s5 + $0x3ac] ss:$16 sps:$4 sm:$0xff]  }
 0x253   :  { %2904 = vmatpush1.bf16.msra.mxu1 %v4300_v43 }
 0x255   :  { %2544 = vmatpush1.bf16.msra.mxu0 %v4207_v46  ;;  %v4291_v46 = vld [vmem:[%s5718_s5 + $0x3a8] ss:$16 sps:$4 sm:$0xff]  }
 0x256   :  { %2545 = vmatprep.subr.bf16.mxu0 %v4212_v56  ;;  %v4296_v56 = vld [vmem:[%s5718_s5 + $0x3cc] ss:$16 sps:$4 sm:$0xff]  }
 0x259   :  { %2546 = vmatpush1.bf16.msra.mxu0 %v4210_v57  ;;  %v4294_v57 = vld [vmem:[%s5718_s5 + $0x3c8] ss:$16 sps:$4 sm:$0xff]  }
 0x25a   :  { %2547 = vmatprep.subr.bf16.mxu0 %v4215_v58  ;;  %v4299_v58 = vld [vmem:[%s5718_s5 + $0x3ec] ss:$16 sps:$4 sm:$0xff]  }
 0x25d   :  { %2548 = vmatpush1.bf16.msra.mxu0 %v4213_v59  ;;  %v4297_v59 = vld [vmem:[%s5718_s5 + $0x3e8] ss:$16 sps:$4 sm:$0xff]  }
 0x25e   :  { %2549 = vmatprep.subr.bf16.mxu0 %v4218_v60 }
 0x261   :  { %2550 = vmatpush1.bf16.msra.mxu0 %v4216_v61 }
 0x262   :  { %2551 = vmatprep.subr.bf16.mxu0 %v4221_v62 }
 0x265   :  { %2552 = vmatpush1.bf16.msra.mxu0 %v4219_v63 }
 0x266   :  { %2553 = vmatprep.subr.bf16.mxu0 %v4224_v0 }
 0x269   :  { %2554 = vmatpush1.bf16.msra.mxu0 %v4222_v1  ;;  %v4305_v1 = vld [vmem:[%s5720_s7 + $0x24] ss:$16 sps:$4 sm:$0xff]  }
 0x26a   :  { %2555 = vmatprep.subr.bf16.mxu0 %v4227_v3  ;;  %2905 = vmatprep.subr.bf16.mxu1 %v4305_v1 }
 0x26d   :  { %2556 = vmatpush1.bf16.msra.mxu0 %v4225_v4 }
 0x26e   :  { %2557 = vmatprep.subr.bf16.mxu0 %v4230_v6 }
 0x271   :  { %2558 = vmatpush1.bf16.msra.mxu0 %v4228_v8  ;;  %v4303_v8 = vld [vmem:[%s5720_s7 + $0x20] ss:$16 sps:$4 sm:$0xff]  }
 0x272   :  { %2559 = vmatprep.subr.bf16.mxu0 %v4233_v9  ;;  %2906 = vmatpush1.bf16.msra.mxu1 %v4303_v8 }
 0x275   :  { %2560 = vmatpush1.bf16.msra.mxu0 %v4231_v10 }
 0x276   :  { %2561 = vmatprep.subr.bf16.mxu0 %v4236_v11  ;;  %v4306_v11 = vld [vmem:[%s5720_s7 + $0x40] ss:$16 sps:$4 sm:$0xff]  }
 0x279   :  { %2562 = vmatpush1.bf16.msra.mxu0 %v4234_v12  ;;  %v4311_v12 = vld [vmem:[%s5720_s7 + $0x64] ss:$16 sps:$4 sm:$0xff]  }
 0x27a   :  { %2563 = vmatprep.subr.bf16.mxu0 %v4239_v13  ;;  %v4309_v13 = vld [vmem:[%s5720_s7 + $0x60] ss:$16 sps:$4 sm:$0xff]  }
 0x27d   :  { %2564 = vmatpush1.bf16.msra.mxu0 %v4237_v14  ;;  %v4314_v14 = vld [vmem:[%s5720_s7 + $0x84] ss:$16 sps:$4 sm:$0xff]  }
 0x27e   :  { %2565 = vmatprep.subr.bf16.mxu0 %v4242_v15  ;;  %v4312_v15 = vld [vmem:[%s5720_s7 + $0x80] ss:$16 sps:$4 sm:$0xff]  }
 0x281   :  { %2566 = vmatpush1.bf16.msra.mxu0 %v4240_v16  ;;  %v4317_v16 = vld [vmem:[%s5720_s7 + $0xa4] ss:$16 sps:$4 sm:$0xff]  }
 0x282   :  { %2567 = vmatprep.subr.bf16.mxu0 %v4245_v17  ;;  %v4315_v17 = vld [vmem:[%s5720_s7 + $0xa0] ss:$16 sps:$4 sm:$0xff]  }
 0x285   :  { %2568 = vmatpush1.bf16.msra.mxu0 %v4243_v18  ;;  %v4320_v18 = vld [vmem:[%s5720_s7 + $0xc4] ss:$16 sps:$4 sm:$0xff]  }
 0x286   :  { %2569 = vmatprep.subr.bf16.mxu0 %v4248_v19  ;;  %v4318_v19 = vld [vmem:[%s5720_s7 + $0xc0] ss:$16 sps:$4 sm:$0xff]  }
 0x289   :  { %2570 = vmatpush1.bf16.msra.mxu0 %v4246_v20  ;;  %v4323_v20 = vld [vmem:[%s5720_s7 + $0xe4] ss:$16 sps:$4 sm:$0xff]  }
 0x28a   :  { %2571 = vmatprep.subr.bf16.mxu0 %v4251_v21  ;;  %v4321_v21 = vld [vmem:[%s5720_s7 + $0xe0] ss:$16 sps:$4 sm:$0xff]  }
 0x28d   :  { %2572 = vmatpush1.bf16.msra.mxu0 %v4249_v22  ;;  %v4326_v22 = vld [vmem:[%s5720_s7 + $0xc] ss:$16 sps:$4 sm:$0xff]  }
 0x28e   :  { %2582 = vmatprep.subr.bf16.mxu0 %v4254_v24  ;;  %v2623_v24 = vld [vmem:[%s5719_s6] sm:$0x3] }
 0x290   :  { %2574 = vmatmul.mubr.bf16.vlgmr.msra.gmra.mrb[16].mxu0 %v5270_v55  ;;  %v4290_v55 = vld [vmem:[%s5718_s5 + $0x38c] ss:$16 sps:$4 sm:$0xff]  }
 0x291   :  { %2583 = vmatpush1.bf16.msra.mxu0 %v4252_v25  ;;  %2614 = vmatprep.mubr.bf16.mxu0 %v5265_v53  ;;  %v4287_v53 = vld [vmem:[%s5718_s5 + $0x36c] ss:$16 sps:$4 sm:$0xff]  }
 0x292   :  { %2584 = vmatprep.subr.bf16.mxu0 %v4257_v26 }
 0x295   :  { %2585 = vmatpush1.bf16.msra.mxu0 %v4255_v27  ;;  %v2636_v27 = vrot.slane %v2623_v24, %v4790_v37 }
 0x296   :  { %2586 = vmatprep.subr.bf16.mxu0 %v4260_v28 }
 0x299   :  { %2587 = vmatpush1.bf16.msra.mxu0 %v4258_v29 }
 0x29a   :  { %2588 = vmatprep.subr.bf16.mxu0 %v4263_v30  ;;  %v2640_v30 = vrot.slane %v2623_v24, %v4796_v40  ;;  %v4341_v24 = vld [vmem:[%s5720_s7 + $0xac] ss:$16 sps:$4 sm:$0xff]  }
 0x29d   :  { %2589 = vmatpush1.bf16.msra.mxu0 %v4261_v31 }
 0x29e   :  { %2590 = vmatprep.subr.bf16.mxu0 %v4266_v32 }
 0x2a1   :  { %2591 = vmatpush1.bf16.msra.mxu0 %v4264_v33 }
 0x2a2   :  { %2592 = vmatprep.subr.bf16.mxu0 %v4269_v36 }
 0x2a5   :  { %2593 = vmatpush1.bf16.msra.mxu0 %v4267_v38 }
 0x2a6   :  { %2594 = vmatprep.subr.bf16.mxu0 %v4272_v39 }
 0x2a9   :  { %2595 = vmatpush1.bf16.msra.mxu0 %v4270_v41 }
 0x2aa   :  { %2596 = vmatprep.subr.bf16.mxu0 %v4275_v42 }
 0x2ad   :  { %2597 = vmatpush1.bf16.msra.mxu0 %v4273_v45 }
 0x2ae   :  { %2598 = vmatprep.subr.bf16.mxu0 %v4278_v47 }
 0x2b1   :  { %2599 = vmatpush1.bf16.msra.mxu0 %v4276_v48 }
 0x2b2   :  { %2600 = vmatprep.subr.bf16.mxu0 %v4281_v49 }
 0x2b5   :  { %2601 = vmatpush1.bf16.msra.mxu0 %v4279_v50 }
 0x2b6   :  { %2602 = vmatprep.subr.bf16.mxu0 %v4284_v51 }
 0x2b9   :  { %2603 = vmatpush1.bf16.msra.mxu0 %v4282_v52 }
 0x2ba   :  { %2604 = vmatprep.subr.bf16.mxu0 %v4287_v53 }
 0x2bd   :  { %2605 = vmatpush1.bf16.msra.mxu0 %v4285_v54 }
 0x2be   :  { %2606 = vmatprep.subr.bf16.mxu0 %v4290_v55 }
 0x2c1   :  { %2607 = vmatpush1.bf16.msra.mxu0 %v4288_v23 }
 0x2c2   :  { %2608 = vmatprep.subr.bf16.mxu0 %v4293_v7 }
 0x2c5   :  { %2609 = vmatpush1.bf16.msra.mxu0 %v4291_v46 }
 0x2c6   :  { %2610 = vmatprep.subr.bf16.mxu0 %v4296_v56 }
 0x2c9   :  { %2611 = vmatpush1.bf16.msra.mxu0 %v4294_v57 }
 0x2ca   :  { %2612 = vmatprep.subr.bf16.mxu0 %v4299_v58 }
 0x2cd   :  { %2613 = vmatpush1.bf16.msra.mxu0 %v4297_v59 }
 0x2ce   :  { %3851 = vmatprep.subr.bf16.mxu0 %v4413_v5 }
 0x2d0   :  { %2615 = vmatmul.mubr.bf16.vlgmr.msra.gmra.mrb[16].mxu0 %v5272_v34  ;;  %v4308_v34 = vld [vmem:[%s5720_s7 + $0x44] ss:$16 sps:$4 sm:$0xff]  }
 0x2d1   :  { %2907 = vmatprep.subr.bf16.mxu1 %v4308_v34  ;;  %3859 = vmatprep.mubr.msk.bf16.mxu0 %vm4415_vm6, %v4413_v5 }
 0x2d2   :  { %2908 = vmatpush1.bf16.msra.mxu1 %v4306_v11 }
 0x2d3   :  { %2909 = vmatprep.subr.bf16.mxu1 %v4311_v12 }
 0x2d6   :  { %2910 = vmatpush1.bf16.msra.mxu1 %v4309_v13  ;;  %v4324_v13 = vld [vmem:[%s5720_s7 + $0x8] ss:$16 sps:$4 sm:$0xff]  }
 0x2d7   :  { %2911 = vmatprep.subr.bf16.mxu1 %v4314_v14 }
 0x2da   :  { %2912 = vmatpush1.bf16.msra.mxu1 %v4312_v15 }
 0x2db   :  { %2913 = vmatprep.subr.bf16.mxu1 %v4317_v16  ;;  %v4329_v16 = vld [vmem:[%s5720_s7 + $0x2c] ss:$16 sps:$4 sm:$0xff]  }
 0x2de   :  { %2914 = vmatpush1.bf16.msra.mxu1 %v4315_v17  ;;  %v4327_v17 = vld [vmem:[%s5720_s7 + $0x28] ss:$16 sps:$4 sm:$0xff]  }
 0x2df   :  { %2915 = vmatprep.subr.bf16.mxu1 %v4320_v18  ;;  %v4332_v18 = vld [vmem:[%s5720_s7 + $0x4c] ss:$16 sps:$4 sm:$0xff]  }
 0x2e2   :  { %2916 = vmatpush1.bf16.msra.mxu1 %v4318_v19  ;;  %v4330_v19 = vld [vmem:[%s5720_s7 + $0x48] ss:$16 sps:$4 sm:$0xff]  }
 0x2e3   :  { %2917 = vmatprep.subr.bf16.mxu1 %v4323_v20  ;;  %v4335_v20 = vld [vmem:[%s5720_s7 + $0x6c] ss:$16 sps:$4 sm:$0xff]  }
 0x2e6   :  { %2918 = vmatpush1.bf16.msra.mxu1 %v4321_v21  ;;  %v4338_v21 = vld [vmem:[%s5720_s7 + $0x8c] ss:$16 sps:$4 sm:$0xff]  }
 0x2e7   :  { %2944 = vmatprep.subr.bf16.mxu1 %v4326_v22  ;;  %v4336_v22 = vld [vmem:[%s5720_s7 + $0x88] ss:$16 sps:$4 sm:$0xff]  }
 0x323   :  { %v2493_v60 = vpop.f32.mrb[12].mxu0  ;;  %v2534_v61 = vpop.f32.mrb[12].mxu1 }
 0x324   :  { %v2535_v62 = vadd.f32 %v2534_v61, %v2493_v60  ;;  %v2495_v63 = vpop.f32.mrb[13].mxu0  ;;  %v2536_v0 = vpop.f32.mrb[13].mxu1 }
 0x325   :  { %v2537_v3 = vadd.f32 %v2536_v0, %v2495_v63  ;;  %v2497_v4 = vpop.f32.mrb[14].mxu0  ;;  %v2538_v6 = vpop.f32.mrb[14].mxu1 }
 0x326   :  { %v2498_v9 = vpop.f32.mrb[15].mxu0  ;;  %v2539_v10 = vpop.f32.mrb[15].mxu1 }
 0x3a3   :  { %v2616_v25 = vpop.f32.mrb[16].mxu0 }
 0x3a4   :  { %v2626_v26 = vrot.slane %v2616_v25, 1  ;;  %v2618_v28 = vpop.f32.mrb[17].mxu0  ;;  %v4339_v25 = vld [vmem:[%s5720_s7 + $0xa8] ss:$16 sps:$4 sm:$0xff]  }
 0x3a5   :  { %v2627_v29 = vrot.slane %v2618_v28, 1  ;;  %v2620_v31 = vpop.f32.mrb[18].mxu0  ;;  %v4347_v28 = vld [vmem:[%s5720_s7 + $0xec] ss:$16 sps:$4 sm:$0xff]  }
 0x3a6   :  { %v2630_v32 = vadd.f32 %v2626_v26, %v2535_v62  ;;  %v2621_v33 = vpop.f32.mrb[19].mxu0  ;;  %v4344_v26 = vld [vmem:[%s5720_s7 + $0xcc] ss:$16 sps:$4 sm:$0xff]   ;;  %v4349_v31 = vld [vmem:[%s5722_s9] sm:$0xff]  }
 0x3a7   :  { %v2631_v36 = vadd.f32 %v2627_v29, %v2537_v3  ;;  %v4345_v29 = vld [vmem:[%s5720_s7 + $0xe8] ss:$16 sps:$4 sm:$0xff]  }
 0x3a8   :  { %v2643_v38 = vadd.f32 %v2636_v27, %v2630_v32  ;;  %v4342_v27 = vld [vmem:[%s5720_s7 + $0xc8] ss:$16 sps:$4 sm:$0xff]  }
 0x3a9   :  { %v2644_v39 = vadd.f32 %v2640_v30, %v2631_v36  ;;  %v4348_v30 = vld [vmem:[%s5722_s9 + $0x40] sm:$0xff]   ;;  %v4350_v32 = vld [vmem:[%s5722_s9 + $0x48] sm:$0xff]   ;;  %v4352_v36 = vld [vmem:[%s5722_s9 + $0x50] sm:$0xff]  }
 0x3aa   :  { %v2645_v41 = vmax.f32 %v2643_v38, 0.0  ;;  %v4351_v33 = vld [vmem:[%s5722_s9 + $0x8] sm:$0xff]   ;;  %v4353_v38 = vld [vmem:[%s5722_s9 + $0x10] sm:$0xff]  }
 0x3ab   :  { %v2646_v42 = vmax.f32 %v2644_v39, 0.0  ;;  %v4354_v39 = vld [vmem:[%s5722_s9 + $0x58] sm:$0xff]  }
 0x3ac   :  { %v2648_v43 = vsel %vm2647_vm4, %v2645_v41, 0.0  ;;  %v2666_v44 = vrot.slane %v2645_v41, 3  ;;  %v4355_v41 = vld [vmem:[%s5722_s9 + $0x18] sm:$0xff]  }
 0x3ad   :  { %v2649_v45 = vrot.slane %v2648_v43, 4  ;;  %v2655_v47 = vsel %vm2647_vm4, %v2646_v42, 0.0  ;;  %v2667_v48 = vrot.slane %v2646_v42, 3  ;;  %v4356_v42 = vld [vmem:[%s5722_s9 + $0x60] sm:$0xff]  }
 0x3ae   :  { %v2670_v49 = vsel %vm2647_vm4, %v2666_v44, 0.0  ;;  %v2656_v50 = vrot.slane %v2655_v47, 4  ;;  %v4358_v44 = vld [vmem:[%s5722_s9 + $0x68] sm:$0xff]  }
 0x3af   :  { %v2650_v51 = vadd.f32 %v2649_v45, %v2648_v43  ;;  %v2671_v52 = vrot.slane %v2670_v49, 4  ;;  %v2677_v53 = vsel %vm2647_vm4, %v2667_v48, 0.0  ;;  %v4357_v43 = vld [vmem:[%s5722_s9 + $0x20] sm:$0xff]   ;;  %v4359_v45 = vld [vmem:[%s5722_s9 + $0x28] sm:$0xff]   ;;  %v4361_v48 = vld [vmem:[%s5722_s9 + $0x30] sm:$0xff]  }
 0x3b0   :  { %v2657_v54 = vadd.f32 %v2656_v50, %v2655_v47  ;;  %v2678_v55 = vrot.slane %v2677_v53, 4  ;;  %v4360_v47 = vld [vmem:[%s5722_s9 + $0x70] sm:$0xff]   ;;  %v4363_v50 = vld [vmem:[%s5722_s9 + $0x38] sm:$0xff]  }
 0x3b1   :  { %v2651_v23 = vrot.slane %v2650_v51, 2  ;;  %v2672_v7 = vadd.f32 %v2671_v52, %v2670_v49  ;;  %v4362_v49 = vld [vmem:[%s5722_s9 + $0x78] sm:$0xff]   ;;  %v2721_v52 = vld [vmem:[%s5721_s8] sm:$0xf] }
 0x3b2   :  { %v2658_v46 = vrot.slane %v2657_v54, 2  ;;  %v2679_v56 = vadd.f32 %v2678_v55, %v2677_v53  ;;  %v2726_v53 = vrot.slane %v2721_v52, %v4790_v37  ;;  %v4366_v37 = vld [vmem:[%s5722_s9 + $0xc8] sm:$0xff]  }
 0x3b3   :  { %v2652_v57 = vadd.f32 %v2651_v23, %v2650_v51  ;;  %v2673_v58 = vrot.slane %v2672_v7, 2  ;;  %v4364_v51 = vld [vmem:[%s5722_s9 + $0xc0] sm:$0xff]  }
 0x3b4   :  { %v2659_v59 = vadd.f32 %v2658_v46, %v2657_v54  ;;  %v2680_v60 = vrot.slane %v2679_v56, 2  ;;  %v2730_v54 = vrot.slane %v2721_v52, %v4796_v40  ;;  %v4367_v40 = vld [vmem:[%s5722_s9 + $0x88] sm:$0xff]  }
 0x3b5   :  { %v2653_v61 = vrot.slane %v2652_v57, 1  ;;  %v2674_v62 = vadd.f32 %v2673_v58, %v2672_v7 }
 0x3b6   :  { %v2660_v63 = vrot.slane %v2659_v59, 1  ;;  %v2681_v0 = vadd.f32 %v2680_v60, %v2679_v56 }
 0x3b7   :  { %v2654_v1 = vadd.f32 %v2653_v61, %v2652_v57  ;;  %v2675_v3 = vrot.slane %v2674_v62, 1  ;;  %v4365_v61 = vld [vmem:[%s5722_s9 + $0x80] sm:$0xff]  }
 0x3b8   :  { %v2661_v4 = vadd.f32 %v2660_v63, %v2659_v59  ;;  %v2682_v6 = vrot.slane %v2681_v0, 1  ;;  %v4368_v63 = vld [vmem:[%s5722_s9 + $0xd0] sm:$0xff]  }
 0x3b9   :  { %v2676_v8 = vadd.f32 %v2675_v3, %v2674_v62  ;;  %v4371_v3 = vld [vmem:[%s5722_s9 + $0x98] sm:$0xff]  }
 0x3ba   :  { %v2683_v9 = vadd.f32 %v2682_v6, %v2681_v0  ;;  %v2662_v10 = vadd.f32 %v2661_v4, %v2654_v1  ;;  %v4369_v0 = vld [vmem:[%s5722_s9 + $0x90] sm:$0xff]   ;;  %v4370_v1 = vld [vmem:[%s5722_s9 + $0xd8] sm:$0xff]   ;;  %v4372_v4 = vld [vmem:[%s5722_s9 + $0xe0] sm:$0xff]  }
 0x3bb   :  { %v4373_v6 = vld [vmem:[%s5722_s9 + $0xa0] sm:$0xff]  }
 0x3bc   :  { %v2684_v34 = vadd.f32 %v2683_v9, %v2676_v8  ;;  %v2663_v11 = vmul.f32 0.25, %v2662_v10  ;;  %v4374_v8 = vld [vmem:[%s5722_s9 + $0xe8] sm:$0xff]   ;;  %v2733_v9 = vsub.s32 2, %v4787_v35 }
 0x3bd   :  { %v4375_v10 = vld [vmem:[%s5722_s9 + $0xa8] sm:$0xff]  }
 0x3be   :  { %v2685_v12 = vmul.f32 0.25, %v2684_v34  ;;  %v2737_v34 = vsub.s32 3, %v4787_v35 }
 0x3c0   :  { %v2687_v14 = vsel %vm2686_vm5, %v2663_v11, %v2685_v12  ;;  %v4376_v11 = vld [vmem:[%s5722_s9 + $0xf0] sm:$0xff]   ;;  %v2734_v12 = vrot.slane %v2721_v52, %v2733_v9 }
 0x3c1   :  { %v2688_v15 = vpack.c.bf16 %v2687_v14, %v2687_v14  ;;  %v4377_v14 = vld [vmem:[%s5722_s9 + $0xb0] sm:$0xff]  }
 0x3c3   :  { %2936 = vmatmul.mubr.bf16.vlgmr.msra.gmra.mrb[16].mxu1 %v2688_v15 }
 0x3c4   :  { %2945 = vmatpush1.bf16.msra.mxu1 %v4324_v13  ;;  %2976 = vmatprep.mubr.bf16.mxu1 %v4412_v2  ;;  %v4333_v2 = vld [vmem:[%s5720_s7 + $0x68] ss:$16 sps:$4 sm:$0xff]   ;;  %v2738_v13 = vrot.slane %v2721_v52, %v2737_v34 }
 0x3c5   :  { %2946 = vmatprep.subr.bf16.mxu1 %v4329_v16 }
 0x3c8   :  { %2947 = vmatpush1.bf16.msra.mxu1 %v4327_v17 }
 0x3c9   :  { %2948 = vmatprep.subr.bf16.mxu1 %v4332_v18 }
 0x3cc   :  { %2949 = vmatpush1.bf16.msra.mxu1 %v4330_v19 }
 0x3cd   :  { %2950 = vmatprep.subr.bf16.mxu1 %v4335_v20  ;;  %v4379_v20 = vld [vmem:[%s5722_s9 + $0xb8] sm:$0xff]  }
 0x3d0   :  { %2951 = vmatpush1.bf16.msra.mxu1 %v4333_v2 }
 0x3d1   :  { %2952 = vmatprep.subr.bf16.mxu1 %v4338_v21 }
 0x3d4   :  { %2953 = vmatpush1.bf16.msra.mxu1 %v4336_v22 }
 0x3d5   :  { %2954 = vmatprep.subr.bf16.mxu1 %v4341_v24 }
 0x3d8   :  { %2955 = vmatpush1.bf16.msra.mxu1 %v4339_v25 }
 0x3d9   :  { %2956 = vmatprep.subr.bf16.mxu1 %v4344_v26  ;;  %v4380_v26 = vld [vmem:[%s5724_s11] sm:$0xff]  }
 0x3da   :  { %3852 = vmatpush3.bf16.msra.mxu0 %v4380_v26 }
 0x3db   :  { %3853 = vmatprep.subr.bf16.mxu0 %v4413_v5 }
 0x3dc   :  { %2957 = vmatpush1.bf16.msra.mxu1 %v4342_v27  ;;  %v4381_v27 = vld [vmem:[%s5724_s11 + $0x8] sm:$0xff]  }
 0x3dd   :  { %2958 = vmatprep.subr.bf16.mxu1 %v4347_v28  ;;  %v4382_v28 = vld [vmem:[%s5724_s11 + $0x10] sm:$0xff]  }
 0x3de   :  { %3854 = vmatpush3.bf16.msra.mxu0 %v4381_v27 }
 0x3df   :  { %3855 = vmatprep.subr.bf16.mxu0 %v4413_v5 }
 0x3e0   :  { %2959 = vmatpush1.bf16.msra.mxu1 %v4345_v29  ;;  %v4383_v29 = vld [vmem:[%s5724_s11 + $0x18] sm:$0xff]  }
 0x3e1   :  { %3802 = vmatprep.subr.bf16.mxu1 %v4348_v30 }
 0x3e2   :  { %3856 = vmatpush3.bf16.msra.mxu0 %v4382_v28 }
 0x3e3   :  { %2977 = vmatmul.mubr.bf16.vlgmr.msra.gmra.mrb[20].mxu1 %v2688_v15  ;;  %v4378_v15 = vld [vmem:[%s5722_s9 + $0xf8] sm:$0xff]   ;;  %3857 = vmatprep.subr.bf16.mxu0 %v4413_v5  ;;  %v3796_v5 = vld [vmem:[%s5725_s12] ss:$0 sm:$0xff] }
 0x3e4   :  { %3803 = vmatpush3.bf16.msra.mxu1 %v4349_v31 }
 0x3e5   :  { %3804 = vmatprep.subr.bf16.mxu1 %v4350_v32 }
 0x3e6   :  { %3858 = vmatpush3.bf16.msra.mxu0 %v4383_v29 }
 0x3e8   :  { %3805 = vmatpush3.bf16.msra.mxu1 %v4351_v33 }
 0x3e9   :  { %3806 = vmatprep.subr.bf16.mxu1 %v4352_v36 }
 0x3ec   :  { %3807 = vmatpush3.bf16.msra.mxu1 %v4353_v38  ;;  %v3763_v38 = vld [vmem:[%s5723_s10] ss:$0 sm:$0xff]  ;;  %s4416_s10 = smov [#allocation4]  }
 0x3ed   :  { %3808 = vmatprep.subr.bf16.mxu1 %v4354_v39  ;;  %s3439_s12 = sshll.u32 %s4416_s10, 4  ;;  %s3440_s12 = int_to_ptr.vmem [resolvable:$true] %s3439_s12 }
 0x3ee   :  { %s4388_s0 = scalar_lea.vmem %s3440_s12, 32  ;;  %p4393_p1 = scmp.lt.s32.totalorder %s3440_s12, %s3440_s12 }
 0x3ef   :  { %p4389_p0 = scmp.ne.s32.totalorder %s3440_s12, %s4388_s0  ;;  %p4394_p2 = scmp.lt.s32.totalorder %s4388_s0, %s4388_s0 }
 0x3f0   :  { %3809 = vmatpush3.bf16.msra.mxu1 %v4355_v41 }
 0x3f1   :  { %3810 = vmatprep.subr.bf16.mxu1 %v4356_v42  ;;  %p4395_p3 = por %p4394_p2, %p4393_p1 }
 0x3f3   :  { %p4396_p4 = pnand %p4395_p3, %p4389_p0 }
 0x3f4   :  { %3811 = vmatpush3.bf16.msra.mxu1 %v4357_v43 }
 0x3f5   :  { %3812 = vmatprep.subr.bf16.mxu1 %v4358_v44 }
 0x3f8   :  { %3813 = vmatpush3.bf16.msra.mxu1 %v4359_v45 }
 0x3f9   :  { %3814 = vmatprep.subr.bf16.mxu1 %v4360_v47 }
 0x3fc   :  { %3815 = vmatpush3.bf16.msra.mxu1 %v4361_v48 }
 0x3fd   :  { %3816 = vmatprep.subr.bf16.mxu1 %v4362_v49 }
 0x400   :  { %3817 = vmatpush3.bf16.msra.mxu1 %v4363_v50 }
 0x401   :  { %3824 = vmatprep.subr.bf16.mxu1 %v4364_v51 }
 0x496   :  { %v2937_v55 = vpop.f32.mrb[16].mxu1 }
 0x497   :  { %v2938_v23 = vadd.f32 %v2937_v55, %v2726_v53  ;;  %v2939_v7 = vpop.f32.mrb[17].mxu1 }
 0x498   :  { %v2940_v46 = vadd.f32 %v2939_v7, %v2730_v54  ;;  %v2941_v56 = vpop.f32.mrb[18].mxu1 }
 0x499   :  { %v2985_v57 = vmax.f32 %v2938_v23, 0.0  ;;  %v2942_v58 = vpop.f32.mrb[19].mxu1 }
 0x49a   :  { %v2986_v59 = vmax.f32 %v2940_v46, 0.0 }
 0x49b   :  { %v2989_v62 = vpack.c.bf16 %v2985_v57, %v2985_v57 }
 0x49c   :  { %v2990_v60 = vpack.c.bf16 %v2986_v59, %v2986_v59 }
 0x49e   :  { %3288 = vmatprep.mubr.bf16.mxu1 %v2990_v60 }
 0x49f   :  { %3289 = vmatmul.mubr.bf16.vlgmr.msra.gmra.mrb[24].mxu1 %v2989_v62 }
 0x4a0   :  { %3825 = vmatpush3.bf16.msra.mxu1 %v4365_v61 }
 0x4a1   :  { %3826 = vmatprep.subr.bf16.mxu1 %v4366_v37 }
 0x4a4   :  { %3827 = vmatpush3.bf16.msra.mxu1 %v4367_v40 }
 0x4a5   :  { %3828 = vmatprep.subr.bf16.mxu1 %v4368_v63 }
 0x4a8   :  { %3829 = vmatpush3.bf16.msra.mxu1 %v4369_v0 }
 0x4a9   :  { %3830 = vmatprep.subr.bf16.mxu1 %v4370_v1 }
 0x4ac   :  { %3831 = vmatpush3.bf16.msra.mxu1 %v4371_v3 }
 0x4ad   :  { %3832 = vmatprep.subr.bf16.mxu1 %v4372_v4 }
 0x4b0   :  { %3833 = vmatpush3.bf16.msra.mxu1 %v4373_v6 }
 0x4b1   :  { %3834 = vmatprep.subr.bf16.mxu1 %v4374_v8 }
 0x4b4   :  { %3835 = vmatpush3.bf16.msra.mxu1 %v4375_v10 }
 0x4b5   :  { %3836 = vmatprep.subr.bf16.mxu1 %v4376_v11 }
 0x4b6   :  { %v2978_v16 = vpop.f32.mrb[20].mxu1 }
 0x4b7   :  { %v2979_v17 = vadd.f32 %v2978_v16, %v2734_v12  ;;  %v2980_v35 = vpop.f32.mrb[21].mxu1 }
 0x4b8   :  { %v2981_v18 = vadd.f32 %v2980_v35, %v2738_v13  ;;  %v2982_v19 = vpop.f32.mrb[22].mxu1  ;;  %3837 = vmatpush3.bf16.msra.mxu1 %v4377_v14 }
 0x4b9   :  { %v2987_v2 = vmax.f32 %v2979_v17, 0.0  ;;  %v2983_v21 = vpop.f32.mrb[23].mxu1  ;;  %3838 = vmatprep.subr.bf16.mxu1 %v4378_v15 }
 0x4ba   :  { %v2988_v22 = vmax.f32 %v2981_v18, 0.0 }
 0x4bb   :  { %v2991_v25 = vpack.c.bf16 %v2987_v2, %v2987_v2 }
 0x4bc   :  { %v2992_v24 = vpack.c.bf16 %v2988_v22, %v2988_v22  ;;  %3839 = vmatpush3.bf16.msra.mxu1 %v4379_v20 }
 0x4be   :  { %3328 = vmatprep.mubr.bf16.mxu1 %v2992_v24 }
 0x4bf   :  { %3329 = vmatmul.mubr.bf16.vlgmr.msra.gmra.mrb[28].mxu1 %v2991_v25 }
 0x572   :  { %v3818_v30 = vpop.f32.mrb[24].mxu1 }
 0x573   :  { %v3819_v31 = vpop.f32.mrb[25].mxu1 }
 0x574   :  { %v3820_v32 = vadd.f32 %v3819_v31, %v3818_v30  ;;  %v3821_v33 = vpop.f32.mrb[26].mxu1 }
 0x575   :  { %v3822_v36 = vpop.f32.mrb[27].mxu1 }
 0x576   :  { %v3291_v42 = vadd.f32 %v3820_v32, %v3763_v38 }
 0x592   :  { %v3840_v39 = vpop.f32.mrb[28].mxu1 }
 0x593   :  { %v3841_v41 = vpop.f32.mrb[29].mxu1 }
 0x594   :  { %v3842_v43 = vadd.f32 %v3841_v41, %v3840_v39  ;;  %v3843_v44 = vpop.f32.mrb[30].mxu1 }
 0x595   :  { %v3844_v45 = vpop.f32.mrb[31].mxu1 }
 0x596   :  { %v3331_v47 = vadd.f32 %v3842_v43, %v3291_v42 }
 0x598   :  { %v3336_v48 = vmax.f32 %v3331_v47, 0.0 }
 0x59a   :  { %v3337_v49 = vpack.c.bf16 %v3336_v48, %v3336_v48 }
 0x59c   :  { %3860 = vmatmul.mubr.msk.bf16.vlgmr.msra.gmra.mrb[20].mxu0 %vm3377_vm7, %v3337_v49 }
 0x66f   :  { %v3415_v50 = vpop.f32.mrb[20].mxu0 }
 0x670   :  { %v3416_v51 = vadd.f32 %v3796_v5, %v3415_v50  ;;  %v3861_v52 = vpop.f32.mrb[21].mxu0 }
 0x671   :  { %v3418_v53 = vpop.f32.mrb[22].mxu0 }
 0x672   :  { %v3862_v54 = vpop.f32.mrb[23].mxu0  ;;  %v3421_v55 = vsel %vm2647_vm4, %v3416_v51, -inf }
 0x673   :  { %3422 = vmax.xlane.f32.xlu0 %v3421_v55 }
 0x700   :  { %v3423_v23 = vpop.xlane.xlu0 %3422 }
 0x701   :  { %v3424_v7 = vsub.f32 %v3416_v51, %v3423_v23 }
 0x703   :  { %v3425_v46 = vmul.f32 1.442695, %v3424_v7 }
 0x705   :  { %4384 = vpow2.f32 %v3425_v46 }
 0x70f   :  { %v4385_v56 = vpop.eup %4384 }
 0x710   :  { %v3427_v57 = vsel %vm2647_vm4, %v4385_v56, 0.0 }
 0x711   :  { %3428 = vadd.xlane.f32.xlu0 %v3427_v57 }
 0x79e   :  { %v3429_v58 = vpop.xlane.xlu0 %3428 }
 0x79f   :  { %4386 = vrcp.f32 %v3429_v58 }
 0x7a9   :  { %v4387_v59 = vpop.eup %4386 }
 0x7aa   :  { %v3431_v60 = vmul.f32 %v4387_v59, %v4385_v56 }
 0x7ac   :  { %3432 = vst [vmem:[#allocation4] sm:$0x3] %v3431_v60 }
 0x7ad   :  { %4399 = shalt.err (!%p4396_p4)
}
 0x7ae   :  { %s4400_s29 = scalar_lea.hbm %s5726_s13, 32 }
 0x7af   :  { %p4401_p5 = scmp.ne.s32.totalorder %s5726_s13, %s4400_s29  ;;  %p4404_p6 = scmp.lt.u32.totalorder %s4400_s29, %s5726_s13 }
 0x7b1   :  { %p4406_p7 = pnand %p4404_p6, %p4401_p5 }
 0x7b3   :  { %4409 = shalt.err (!%p4406_p7)
}
 0x7b4   :  { %3442 = dma.vmem_to_hbm [thread:$0]  %s3440_s12, 32, %s5726_s13, [#allocation5]  }
 0x7b5   :  { %4410 = dma.done.wait [#allocation5], 32  }
 0x7b6   :  { %4411 = vsyncadd [#allocation5], 4294967264 }
 0x7b7   :  { %3446 = vsyncpa [#allocation5], 1 }

</bundles_post_ra>
